<compile_context>
chip_gen: v5e
topology: v5e:2x2
jax: 0.10.0
libtpu: 0.0.40
codegen_flags: <defaults>
</compile_context>

<pallas_src>
import functools
import math

import jax
import jax.numpy as jnp
from jax.experimental import pallas as pl
from jax.experimental.pallas import tpu as pltpu

LN_EPS = 1e-12            # BERT layer-norm epsilon
_TM_TARGET = 256          # token-tile rows (multiple of 8; fits v7x 64 MiB VMEM comfortably)
_VMEM_LIMIT = 64 * 1024 * 1024


def _round_up(x, m):
    return ((x + m - 1) // m) * m


def _erf(x):
    """Abramowitz & Stegun 7.1.26 erf approximation (|err| < 1.5e-7).

    Built only from VPU/EUP-supported ops (mul/add/div/exp/abs/select), so it lowers
    cleanly inside Pallas TPU kernels and matches torch's exact erf-gelu to ~1e-7.
    """
    a1, a2, a3, a4, a5 = 0.254829592, -0.284496736, 1.421413741, -1.453152027, 1.061405429
    p = 0.3275911
    s = jnp.where(x < 0.0, -1.0, 1.0)
    ax = jnp.abs(x)
    t = 1.0 / (1.0 + p * ax)
    poly = ((((a5 * t + a4) * t + a3) * t + a2) * t + a1) * t
    return s * (1.0 - poly * jnp.exp(-ax * ax))


def _gelu(x):
    # torch.nn.functional.gelu default = exact erf-based gelu
    return 0.5 * x * (1.0 + _erf(x * 0.7071067811865476))


# ---------------------------------------------------------------------------
# Kernel 1: dense (+ bias, optional gelu).  Weight resident in VMEM; grid over M only.
# ---------------------------------------------------------------------------
def dense_kernel(x_ref, w_ref, b_ref, o_ref, *, act):
    acc = jnp.dot(x_ref[...].astype(jnp.bfloat16), w_ref[...],
                  preferred_element_type=jnp.float32)
    acc = acc + b_ref[...]
    if act == "gelu":
        acc = _gelu(acc)
    o_ref[...] = acc.astype(o_ref.dtype)


def _dense(x2d, weight, bias, act=None, tm_target=_TM_TARGET):
    """x2d: [M, K] fp32, weight: [K, N] fp32 (cast to bf16 for the MXU), bias: [N]."""
    M, K = x2d.shape
    N = weight.shape[1]
    tm = min(tm_target, _round_up(M, 8))
    Mp = _round_up(M, tm)
    x_p = jnp.pad(x2d, ((0, Mp - M), (0, 0))) if Mp != M else x2d
    w_bf = weight.astype(jnp.bfloat16)
    b2 = bias.reshape(1, N)

    out = pl.pallas_call(
        functools.partial(dense_kernel, act=act),
        out_shape=jax.ShapeDtypeStruct((Mp, N), jnp.float32),
        grid_spec=pltpu.PrefetchScalarGridSpec(
            num_scalar_prefetch=0,
            grid=(Mp // tm,),
            in_specs=[
                pl.BlockSpec((tm, K), lambda i: (i, 0)),   # activation tile
                pl.BlockSpec((K, N), lambda i: (0, 0)),    # full weight, VMEM-resident
                pl.BlockSpec((1, N), lambda i: (0, 0)),    # bias
            ],
            out_specs=pl.BlockSpec((tm, N), lambda i: (i, 0)),
        ),
        compiler_params=pltpu.CompilerParams(
            dimension_semantics=("parallel",),
            vmem_limit_bytes=_VMEM_LIMIT),
        cost_estimate=pl.CostEstimate(
            flops=2 * Mp * K * N,
            transcendentals=(Mp * N if act == "gelu" else 0),
            bytes_accessed=Mp * K * 4 + K * N * 2 + N * 4 + Mp * N * 4),
    )(x_p, w_bf, b2)
    return out[:M] if Mp != M else out


# ---------------------------------------------------------------------------
# Kernel 2: fused dense + bias + residual + LayerNorm (BertSelfOutput / BertOutput).
# ---------------------------------------------------------------------------
def dense_residual_ln_kernel(x_ref, w_ref, b_ref, res_ref, gamma_ref, beta_ref,
                             o_ref, *, eps):
    acc = jnp.dot(x_ref[...].astype(jnp.bfloat16), w_ref[...],
                  preferred_element_type=jnp.float32)
    # TODO(synk): training-mode dropout (p > 0) not implemented; eval-mode identity used.
    h = acc + b_ref[...] + res_ref[...]
    inv_n = 1.0 / h.shape[-1]
    mean = jnp.sum(h, axis=-1, keepdims=True) * inv_n          # single-pass mean / var
    msq = jnp.sum(h * h, axis=-1, keepdims=True) * inv_n
    var = msq - mean * mean
    norm = (h - mean) * jax.lax.rsqrt(var + eps)
    o_ref[...] = (norm * gamma_ref[...] + beta_ref[...]).astype(o_ref.dtype)


def _dense_residual_ln(x2d, weight, bias, res2d, gamma, beta, tm_target=_TM_TARGET):
    """x2d: [M, K], weight: [K, H], res2d: [M, H], gamma/beta: [H]."""
    M, K = x2d.shape
    H = weight.shape[1]
    tm = min(tm_target, _round_up(M, 8))
    Mp = _round_up(M, tm)
    if Mp != M:
        x2d = jnp.pad(x2d, ((0, Mp - M), (0, 0)))
        res2d = jnp.pad(res2d, ((0, Mp - M), (0, 0)))
    w_bf = weight.astype(jnp.bfloat16)

    out = pl.pallas_call(
        functools.partial(dense_residual_ln_kernel, eps=LN_EPS),
        out_shape=jax.ShapeDtypeStruct((Mp, H), jnp.float32),
        grid_spec=pltpu.PrefetchScalarGridSpec(
            num_scalar_prefetch=0,
            grid=(Mp // tm,),
            in_specs=[
                pl.BlockSpec((tm, K), lambda i: (i, 0)),   # matmul input tile
                pl.BlockSpec((K, H), lambda i: (0, 0)),    # full weight, VMEM-resident
                pl.BlockSpec((1, H), lambda i: (0, 0)),    # bias
                pl.BlockSpec((tm, H), lambda i: (i, 0)),   # residual tile
                pl.BlockSpec((1, H), lambda i: (0, 0)),    # LN gamma
                pl.BlockSpec((1, H), lambda i: (0, 0)),    # LN beta
            ],
            out_specs=pl.BlockSpec((tm, H), lambda i: (i, 0)),
        ),
        compiler_params=pltpu.CompilerParams(
            dimension_semantics=("parallel",),
            vmem_limit_bytes=_VMEM_LIMIT),
        cost_estimate=pl.CostEstimate(
            flops=2 * Mp * K * H + 8 * Mp * H,
            transcendentals=Mp,
            bytes_accessed=Mp * K * 4 + K * H * 2 + Mp * H * 4 * 2 + 3 * H * 4),
    )(x2d, w_bf, bias.reshape(1, H), res2d, gamma.reshape(1, H), beta.reshape(1, H))
    return out[:M] if Mp != M else out


# ---------------------------------------------------------------------------
# Kernel 3: scaled-dot-product attention, one (batch, head) per grid step.
# ---------------------------------------------------------------------------
def attention_kernel(q_ref, k_ref, v_ref, mask_ref, o_ref, *, scale):
    q = q_ref[...]                                   # (S, Dh) fp32
    k = k_ref[...]
    v = v_ref[...]
    s = jax.lax.dot_general(q, k, (((1,), (1,)), ((), ())),
                            preferred_element_type=jnp.float32) * scale
    s = s + mask_ref[...]                            # additive mask, (1, S) broadcast
    m = jnp.max(s, axis=-1, keepdims=True)
    p = jnp.exp(s - m)
    p = p / jnp.sum(p, axis=-1, keepdims=True)
    # TODO(synk): attention-probs dropout (training mode) not implemented; eval identity.
    o_ref[...] = jnp.dot(p, v, preferred_element_type=jnp.float32).astype(o_ref.dtype)


def _attention(q, k, v, mask, num_heads):
    """q/k/v: [B, S, H] fp32; mask: [B, S] additive fp32. Returns [B, S, H]."""
    B, S, H = q.shape
    Dh = H // num_heads

    def split_heads(x):
        return x.reshape(B, S, num_heads, Dh).transpose(0, 2, 1, 3)   # [B, NH, S, Dh]

    qh, kh, vh = split_heads(q), split_heads(k), split_heads(v)
    mask3 = mask.reshape(B, 1, S)
    scale = 1.0 / math.sqrt(Dh)

    head_spec = pl.BlockSpec((None, None, S, Dh), lambda b, h: (b, h, 0, 0))
    out = pl.pallas_call(
        functools.partial(attention_kernel, scale=scale),
        out_shape=jax.ShapeDtypeStruct((B, num_heads, S, Dh), jnp.float32),
        grid_spec=pltpu.PrefetchScalarGridSpec(
            num_scalar_prefetch=0,
            grid=(B, num_heads),
            in_specs=[head_spec, head_spec, head_spec,
                      pl.BlockSpec((None, 1, S), lambda b, h: (b, 0, 0))],
            out_specs=pl.BlockSpec((None, None, S, Dh), lambda b, h: (b, h, 0, 0)),
        ),
        compiler_params=pltpu.CompilerParams(
            dimension_semantics=("parallel", "parallel"),
            vmem_limit_bytes=_VMEM_LIMIT),
    )(qh, kh, vh, mask3)
    return out.transpose(0, 2, 1, 3).reshape(B, S, H)


# ---------------------------------------------------------------------------
# Layer / encoder composition (matches BertLayer / BertEncoder forward semantics).
# ---------------------------------------------------------------------------
def bert_layer(hidden, mask, p, num_heads):
    B, S, H = hidden.shape
    x2d = hidden.reshape(B * S, H)

    q = _dense(x2d, p["q_w"], p["q_b"]).reshape(B, S, H)
    k = _dense(x2d, p["k_w"], p["k_b"]).reshape(B, S, H)
    v = _dense(x2d, p["v_w"], p["v_b"]).reshape(B, S, H)

    ctx = _attention(q, k, v, mask, num_heads)                         # BertSelfAttention
    attn_out = _dense_residual_ln(ctx.reshape(B * S, H), p["ao_w"], p["ao_b"],
                                  x2d, p["ao_ln_g"], p["ao_ln_b"])     # BertSelfOutput

    inter = _dense(attn_out, p["i_w"], p["i_b"], act="gelu")           # BertIntermediate
    out = _dense_residual_ln(inter, p["o_w"], p["o_b"],
                             attn_out, p["o_ln_g"], p["o_ln_b"])       # BertOutput
    return out.reshape(B, S, H)


def bert_encoder(hidden_states, attention_mask, layer_params, *,
                 num_heads, output_all_encoded_layers=False):
    """hidden_states: [B, S, H]; attention_mask: [B, S] additive (0 / -10000)."""
    all_layers = []
    hidden = hidden_states
    for p in layer_params:
        hidden = bert_layer(hidden, attention_mask, p, num_heads)
        if output_all_encoded_layers:
            all_layers.append(hidden)
    if not output_all_encoded_layers:
        all_layers.append(hidden)
    return all_layers


# ---------------------------------------------------------------------------
# Pure-JAX fp32 reference (mirrors the torch module, eval mode).
# ---------------------------------------------------------------------------
def reference_encoder(hidden, mask, layer_params, num_heads):
    def ln(x, g, b):
        mean = jnp.mean(x, axis=-1, keepdims=True)
        var = jnp.mean((x - mean) ** 2, axis=-1, keepdims=True)
        return (x - mean) * jax.lax.rsqrt(var + LN_EPS) * g + b

    B, S, H = hidden.shape
    Dh = H // num_heads
    for p in layer_params:
        q = hidden @ p["q_w"] + p["q_b"]
        k = hidden @ p["k_w"] + p["k_b"]
        v = hidden @ p["v_w"] + p["v_b"]
        qh = q.reshape(B, S, num_heads, Dh).transpose(0, 2, 1, 3)
        kh = k.reshape(B, S, num_heads, Dh).transpose(0, 2, 1, 3)
        vh = v.reshape(B, S, num_heads, Dh).transpose(0, 2, 1, 3)
        s = jnp.einsum("bhqd,bhkd->bhqk", qh, kh) / math.sqrt(Dh)
        s = s + mask[:, None, None, :]
        probs = jax.nn.softmax(s, axis=-1)
        ctx = jnp.einsum("bhqk,bhkd->bhqd", probs, vh).transpose(0, 2, 1, 3).reshape(B, S, H)
        attn_out = ln(ctx @ p["ao_w"] + p["ao_b"] + hidden, p["ao_ln_g"], p["ao_ln_b"])
        inter = _gelu(attn_out @ p["i_w"] + p["i_b"])
        hidden = ln(inter @ p["o_w"] + p["o_b"] + attn_out, p["o_ln_g"], p["o_ln_b"])
    return hidden


def init_layer_params(key, H, I):
    ks = jax.random.split(key, 12)

    def w(k, shp):
        return jax.random.normal(k, shp, dtype=jnp.float32) * 0.02

    return {
        "q_w": w(ks[0], (H, H)), "q_b": w(ks[1], (H,)),
        "k_w": w(ks[2], (H, H)), "k_b": w(ks[3], (H,)),
        "v_w": w(ks[4], (H, H)), "v_b": w(ks[5], (H,)),
        "ao_w": w(ks[6], (H, H)), "ao_b": w(ks[7], (H,)),
        "ao_ln_g": jnp.ones((H,), jnp.float32), "ao_ln_b": jnp.zeros((H,), jnp.float32),
        "i_w": w(ks[8], (H, I)), "i_b": w(ks[9], (I,)),
        "o_w": w(ks[10], (I, H)), "o_b": w(ks[11], (H,)),
        "o_ln_g": jnp.ones((H,), jnp.float32), "o_ln_b": jnp.zeros((H,), jnp.float32),
    }


if __name__ == "__main__":
    # small config: batch=2, seq=8, hidden=128, intermediate=512, 4 heads, 2 layers
    B, S, H, I, NH, L = 2, 8, 128, 512, 4, 2

    key = jax.random.PRNGKey(0)
    key, k_h = jax.random.split(key)
    hidden_states = jax.random.normal(k_h, (B, S, H), dtype=jnp.float32)

    # additive attention mask ((1 - pad) * -10000): batch 1 has its last 2 tokens masked
    attention_mask = jnp.zeros((B, S), dtype=jnp.float32).at[1, S - 2:].set(-10000.0)

    layer_keys = jax.random.split(key, L)
    params = [init_layer_params(k, H, I) for k in layer_keys]

    fwd = jax.jit(functools.partial(bert_encoder, num_heads=NH,
                                    output_all_encoded_layers=False))
    out = fwd(hidden_states, attention_mask, params)[-1]
    out = jax.block_until_ready(out)

    ref = reference_encoder(hidden_states, attention_mask, params, NH)
    assert out.shape == (B, S, H)
    max_err = float(jnp.max(jnp.abs(out - ref)))
    # bf16 MXU operands (fp32 accumulation) vs fp32 reference -> loose-but-safe tolerance
    assert jnp.allclose(out, ref, atol=5e-2, rtol=5e-2), f"mismatch vs reference (max abs err {max_err})"

    print("KERNEL_OK")
</pallas_src>

<mosaic_0001>
module attributes {stable_mosaic.version = 11 : i64} {
  func.func @dense_kernel(%arg0: i32, %arg1: memref<16x128xf32, #tpu.memory_space<vmem>>, %arg2: memref<128x128xbf16, #tpu.memory_space<vmem>>, %arg3: memref<1x128xf32, #tpu.memory_space<vmem>>, %arg4: memref<16x128xf32, #tpu.memory_space<vmem>>) attributes {dimension_semantics = [#tpu.dimension_semantics<parallel>], iteration_bounds = array<i64: 1>, scalar_prefetch = 0 : i64, scratch_operands = 0 : i64, tpu.core_type = #tpu.core_type<tc>, window_params = [{transform_indices = @transform_0, window_bounds = array<i64: 16, 128>}, {pipeline_mode = #tpu.pipeline_mode<synchronous>, transform_indices = @transform_1, window_bounds = array<i64: 128, 128>}, {pipeline_mode = #tpu.pipeline_mode<synchronous>, transform_indices = @transform_2, window_bounds = array<i64: 1, 128>}, {transform_indices = @transform_3, window_bounds = array<i64: 16, 128>}]} {
    %c0 = arith.constant 0 : index
    %c0_0 = arith.constant 0 : index
    %0 = vector.load %arg1[%c0, %c0_0] : memref<16x128xf32, #tpu.memory_space<vmem>>, vector<16x128xf32>
    %1 = arith.truncf %0 : vector<16x128xf32> to vector<16x128xbf16>
    %c0_1 = arith.constant 0 : index
    %c0_2 = arith.constant 0 : index
    %2 = vector.load %arg2[%c0_1, %c0_2] : memref<128x128xbf16, #tpu.memory_space<vmem>>, vector<128x128xbf16>
    %cst = arith.constant dense<0.000000e+00> : vector<16x128xf32>
    %3 = tpu.matmul %1, %2, %cst {dimension_numbers = #tpu.dot_dimension_numbers<[1], [0], [0], [1], [0, 0, 1, 1], [], []>} : vector<16x128xbf16>, vector<128x128xbf16>, vector<16x128xf32> -> vector<16x128xf32>
    %c0_3 = arith.constant 0 : index
    %c0_4 = arith.constant 0 : index
    %4 = vector.load %arg3[%c0_3, %c0_4] : memref<1x128xf32, #tpu.memory_space<vmem>>, vector<1x128xf32>
    %5 = vector.broadcast %4 : vector<1x128xf32> to vector<16x128xf32>
    %6 = arith.addf %3, %5 : vector<16x128xf32>
    %c0_5 = arith.constant 0 : index
    %c0_6 = arith.constant 0 : index
    %7 = vector.load %arg4[%c0_5, %c0_6] : memref<16x128xf32, #tpu.memory_space<vmem>>, vector<16x128xf32>
    tpu.vector_store %arg4[%c0_5, %c0_6], %6 {strides = array<i32>} : memref<16x128xf32, #tpu.memory_space<vmem>>, vector<16x128xf32>,
    return
  }
  func.func @transform_0(%arg0: i32) -> (i32, i32) {
    %c0_i32 = arith.constant 0 : i32
    %c0_i32_0 = arith.constant 0 : i32
    return %arg0, %c0_i32 : i32, i32
  }
  func.func @transform_1(%arg0: i32) -> (i32, i32) {
    %c0_i32 = arith.constant 0 : i32
    %c0_i32_0 = arith.constant 0 : i32
    %c0_i32_1 = arith.constant 0 : i32
    return %c0_i32, %c0_i32_0 : i32, i32
  }
  func.func @transform_2(%arg0: i32) -> (i32, i32) {
    %c0_i32 = arith.constant 0 : i32
    %c0_i32_0 = arith.constant 0 : i32
    %c0_i32_1 = arith.constant 0 : i32
    return %c0_i32, %c0_i32_0 : i32, i32
  }
  func.func @transform_3(%arg0: i32) -> (i32, i32) {
    %c0_i32 = arith.constant 0 : i32
    %c0_i32_0 = arith.constant 0 : i32
    return %arg0, %c0_i32 : i32, i32
  }
}

module attributes {stable_mosaic.version = 11 : i64} {
  func.func @attention_kernel(%arg0: i32, %arg1: i32, %arg2: memref<1x1x8x32xf32, #tpu.memory_space<vmem>>, %arg3: memref<1x1x8x32xf32, #tpu.memory_space<vmem>>, %arg4: memref<1x1x8x32xf32, #tpu.memory_space<vmem>>, %arg5: memref<1x1x8xf32, #tpu.memory_space<vmem>>, %arg6: memref<1x1x8x32xf32, #tpu.memory_space<vmem>>) attributes {dimension_semantics = [#tpu.dimension_semantics<parallel>, #tpu.dimension_semantics<parallel>], iteration_bounds = array<i64: 2, 4>, scalar_prefetch = 0 : i64, scratch_operands = 0 : i64, tpu.core_type = #tpu.core_type<tc>, window_params = [{transform_indices = @transform_0, window_bounds = array<i64: 1, 1, 8, 32>}, {transform_indices = @transform_1, window_bounds = array<i64: 1, 1, 8, 32>}, {transform_indices = @transform_2, window_bounds = array<i64: 1, 1, 8, 32>}, {transform_indices = @transform_3, window_bounds = array<i64: 1, 1, 8>}, {transform_indices = @transform_4, window_bounds = array<i64: 1, 1, 8, 32>}]} {
    %c0 = arith.constant 0 : index
    %c0_0 = arith.constant 0 : index
    %c0_1 = arith.constant 0 : index
    %c0_2 = arith.constant 0 : index
    %0 = vector.load %arg2[%c0, %c0_0, %c0_1, %c0_2] : memref<1x1x8x32xf32, #tpu.memory_space<vmem>>, vector<1x1x8x32xf32>
    %1 = vector.shape_cast %0 : vector<1x1x8x32xf32> to vector<8x32xf32>
    %c0_3 = arith.constant 0 : index
    %c0_4 = arith.constant 0 : index
    %c0_5 = arith.constant 0 : index
    %c0_6 = arith.constant 0 : index
    %2 = vector.load %arg3[%c0_3, %c0_4, %c0_5, %c0_6] : memref<1x1x8x32xf32, #tpu.memory_space<vmem>>, vector<1x1x8x32xf32>
    %3 = vector.shape_cast %2 : vector<1x1x8x32xf32> to vector<8x32xf32>
    %c0_7 = arith.constant 0 : index
    %c0_8 = arith.constant 0 : index
    %c0_9 = arith.constant 0 : index
    %c0_10 = arith.constant 0 : index
    %4 = vector.load %arg4[%c0_7, %c0_8, %c0_9, %c0_10] : memref<1x1x8x32xf32, #tpu.memory_space<vmem>>, vector<1x1x8x32xf32>
    %5 = vector.shape_cast %4 : vector<1x1x8x32xf32> to vector<8x32xf32>
    %cst = arith.constant dense<0.000000e+00> : vector<8x8xf32>
    %6 = tpu.matmul %1, %3, %cst {dimension_numbers = #tpu.dot_dimension_numbers<[1], [1], [0], [0], [0, 0, 1, 0], [], []>} : vector<8x32xf32>, vector<8x32xf32>, vector<8x8xf32> -> vector<8x8xf32>
    %cst_11 = arith.constant 0.176776692 : f32
    %7 = vector.broadcast %cst_11 : f32 to vector<8x8xf32>
    %8 = arith.mulf %6, %7 : vector<8x8xf32>
    %c0_12 = arith.constant 0 : index
    %c0_13 = arith.constant 0 : index
    %c0_14 = arith.constant 0 : index
    %9 = vector.load %arg5[%c0_12, %c0_13, %c0_14] : memref<1x1x8xf32, #tpu.memory_space<vmem>>, vector<1x1x8xf32>
    %10 = vector.shape_cast %9 : vector<1x1x8xf32> to vector<1x8xf32>
    %11 = vector.broadcast %10 : vector<1x8xf32> to vector<8x8xf32>
    %12 = arith.addf %8, %11 : vector<8x8xf32>
    %cst_15 = arith.constant dense<0xFF800000> : vector<8xf32>
    %13 = vector.multi_reduction <maximumf>, %12, %cst_15 [1] : vector<8x8xf32> to vector<8xf32>
    %14 = vector.shape_cast %13 : vector<8xf32> to vector<8x1xf32>
    %15 = vector.broadcast %14 : vector<8x1xf32> to vector<8x8xf32>
    %16 = arith.subf %12, %15 : vector<8x8xf32>
    %17 = math.exp %16 : vector<8x8xf32>
    %cst_16 = arith.constant dense<0.000000e+00> : vector<8xf32>
    %18 = vector.multi_reduction <add>, %17, %cst_16 [1] : vector<8x8xf32> to vector<8xf32>
    %19 = vector.shape_cast %18 : vector<8xf32> to vector<8x1xf32>
    %20 = vector.broadcast %19 : vector<8x1xf32> to vector<8x8xf32>
    %21 = arith.divf %17, %20 : vector<8x8xf32>
    %cst_17 = arith.constant dense<0.000000e+00> : vector<8x32xf32>
    %22 = tpu.matmul %21, %5, %cst_17 {dimension_numbers = #tpu.dot_dimension_numbers<[1], [0], [0], [1], [0, 0, 1, 1], [], []>} : vector<8x8xf32>, vector<8x32xf32>, vector<8x32xf32> -> vector<8x32xf32>
    %c0_18 = arith.constant 0 : index
    %c0_19 = arith.constant 0 : index
    %c0_20 = arith.constant 0 : index
    %c0_21 = arith.constant 0 : index
    %23 = vector.load %arg6[%c0_18, %c0_19, %c0_20, %c0_21] : memref<1x1x8x32xf32, #tpu.memory_space<vmem>>, vector<1x1x8x32xf32>
    %24 = vector.shape_cast %23 : vector<1x1x8x32xf32> to vector<8x32xf32>
    %25 = vector.shape_cast %22 : vector<8x32xf32> to vector<1x1x8x32xf32>
    tpu.vector_store %arg6[%c0_18, %c0_19, %c0_20, %c0_21], %25 {strides = array<i32>} : memref<1x1x8x32xf32, #tpu.memory_space<vmem>>, vector<1x1x8x32xf32>,
    return
  }
  func.func @transform_0(%arg0: i32, %arg1: i32) -> (i32, i32, i32, i32) {
    %c0_i32 = arith.constant 0 : i32
    %c0_i32_0 = arith.constant 0 : i32
    %c0_i32_1 = arith.constant 0 : i32
    return %arg0, %arg1, %c0_i32, %c0_i32_0 : i32, i32, i32, i32
  }
  func.func @transform_1(%arg0: i32, %arg1: i32) -> (i32, i32, i32, i32) {
    %c0_i32 = arith.constant 0 : i32
    %c0_i32_0 = arith.constant 0 : i32
    %c0_i32_1 = arith.constant 0 : i32
    return %arg0, %arg1, %c0_i32, %c0_i32_0 : i32, i32, i32, i32
  }
  func.func @transform_2(%arg0: i32, %arg1: i32) -> (i32, i32, i32, i32) {
    %c0_i32 = arith.constant 0 : i32
    %c0_i32_0 = arith.constant 0 : i32
    %c0_i32_1 = arith.constant 0 : i32
    return %arg0, %arg1, %c0_i32, %c0_i32_0 : i32, i32, i32, i32
  }
  func.func @transform_3(%arg0: i32, %arg1: i32) -> (i32, i32, i32) {
    %c0_i32 = arith.constant 0 : i32
    %c0_i32_0 = arith.constant 0 : i32
    %c0_i32_1 = arith.constant 0 : i32
    return %arg0, %c0_i32, %c0_i32_0 : i32, i32, i32
  }
  func.func @transform_4(%arg0: i32, %arg1: i32) -> (i32, i32, i32, i32) {
    %c0_i32 = arith.constant 0 : i32
    %c0_i32_0 = arith.constant 0 : i32
    %c0_i32_1 = arith.constant 0 : i32
    return %arg0, %arg1, %c0_i32, %c0_i32_0 : i32, i32, i32, i32
  }
}

module attributes {stable_mosaic.version = 11 : i64} {
  func.func @dense_residual_ln_kernel(%arg0: i32, %arg1: memref<16x128xf32, #tpu.memory_space<vmem>>, %arg2: memref<128x128xbf16, #tpu.memory_space<vmem>>, %arg3: memref<1x128xf32, #tpu.memory_space<vmem>>, %arg4: memref<16x128xf32, #tpu.memory_space<vmem>>, %arg5: memref<1x128xf32, #tpu.memory_space<vmem>>, %arg6: memref<1x128xf32, #tpu.memory_space<vmem>>, %arg7: memref<16x128xf32, #tpu.memory_space<vmem>>) attributes {dimension_semantics = [#tpu.dimension_semantics<parallel>], iteration_bounds = array<i64: 1>, scalar_prefetch = 0 : i64, scratch_operands = 0 : i64, tpu.core_type = #tpu.core_type<tc>, window_params = [{transform_indices = @transform_0, window_bounds = array<i64: 16, 128>}, {pipeline_mode = #tpu.pipeline_mode<synchronous>, transform_indices = @transform_1, window_bounds = array<i64: 128, 128>}, {pipeline_mode = #tpu.pipeline_mode<synchronous>, transform_indices = @transform_2, window_bounds = array<i64: 1, 128>}, {transform_indices = @transform_3, window_bounds = array<i64: 16, 128>}, {pipeline_mode = #tpu.pipeline_mode<synchronous>, transform_indices = @transform_4, window_bounds = array<i64: 1, 128>}, {pipeline_mode = #tpu.pipeline_mode<synchronous>, transform_indices = @transform_5, window_bounds = array<i64: 1, 128>}, {transform_indices = @transform_6, window_bounds = array<i64: 16, 128>}]} {
    %c0 = arith.constant 0 : index
    %c0_0 = arith.constant 0 : index
    %0 = vector.load %arg1[%c0, %c0_0] : memref<16x128xf32, #tpu.memory_space<vmem>>, vector<16x128xf32>
    %1 = arith.truncf %0 : vector<16x128xf32> to vector<16x128xbf16>
    %c0_1 = arith.constant 0 : index
    %c0_2 = arith.constant 0 : index
    %2 = vector.load %arg2[%c0_1, %c0_2] : memref<128x128xbf16, #tpu.memory_space<vmem>>, vector<128x128xbf16>
    %cst = arith.constant dense<0.000000e+00> : vector<16x128xf32>
    %3 = tpu.matmul %1, %2, %cst {dimension_numbers = #tpu.dot_dimension_numbers<[1], [0], [0], [1], [0, 0, 1, 1], [], []>} : vector<16x128xbf16>, vector<128x128xbf16>, vector<16x128xf32> -> vector<16x128xf32>
    %c0_3 = arith.constant 0 : index
    %c0_4 = arith.constant 0 : index
    %4 = vector.load %arg3[%c0_3, %c0_4] : memref<1x128xf32, #tpu.memory_space<vmem>>, vector<1x128xf32>
    %5 = vector.broadcast %4 : vector<1x128xf32> to vector<16x128xf32>
    %6 = arith.addf %3, %5 : vector<16x128xf32>
    %c0_5 = arith.constant 0 : index
    %c0_6 = arith.constant 0 : index
    %7 = vector.load %arg4[%c0_5, %c0_6] : memref<16x128xf32, #tpu.memory_space<vmem>>, vector<16x128xf32>
    %8 = arith.addf %6, %7 : vector<16x128xf32>
    %cst_7 = arith.constant dense<0.000000e+00> : vector<16xf32>
    %9 = vector.multi_reduction <add>, %8, %cst_7 [1] : vector<16x128xf32> to vector<16xf32>
    %10 = vector.shape_cast %9 : vector<16xf32> to vector<16x1xf32>
    %cst_8 = arith.constant 7.812500e-03 : f32
    %11 = vector.broadcast %cst_8 : f32 to vector<16x1xf32>
    %12 = arith.mulf %10, %11 : vector<16x1xf32>
    %13 = arith.mulf %8, %8 : vector<16x128xf32>
    %cst_9 = arith.constant dense<0.000000e+00> : vector<16xf32>
    %14 = vector.multi_reduction <add>, %13, %cst_9 [1] : vector<16x128xf32> to vector<16xf32>
    %15 = vector.shape_cast %14 : vector<16xf32> to vector<16x1xf32>
    %cst_10 = arith.constant 7.812500e-03 : f32
    %16 = vector.broadcast %cst_10 : f32 to vector<16x1xf32>
    %17 = arith.mulf %15, %16 : vector<16x1xf32>
    %18 = arith.mulf %12, %12 : vector<16x1xf32>
    %19 = arith.subf %17, %18 : vector<16x1xf32>
    %20 = vector.broadcast %12 : vector<16x1xf32> to vector<16x128xf32>
    %21 = arith.subf %8, %20 : vector<16x128xf32>
    %cst_11 = arith.constant 9.99999996E-13 : f32
    %22 = vector.broadcast %cst_11 : f32 to vector<16x1xf32>
    %23 = arith.addf %19, %22 : vector<16x1xf32>
    %24 = math.rsqrt %23 : vector<16x1xf32>
    %25 = vector.broadcast %24 : vector<16x1xf32> to vector<16x128xf32>
    %26 = arith.mulf %21, %25 : vector<16x128xf32>
    %c0_12 = arith.constant 0 : index
    %c0_13 = arith.constant 0 : index
    %27 = vector.load %arg5[%c0_12, %c0_13] : memref<1x128xf32, #tpu.memory_space<vmem>>, vector<1x128xf32>
    %28 = vector.broadcast %27 : vector<1x128xf32> to vector<16x128xf32>
    %29 = arith.mulf %26, %28 : vector<16x128xf32>
    %c0_14 = arith.constant 0 : index
    %c0_15 = arith.constant 0 : index
    %30 = vector.load %arg6[%c0_14, %c0_15] : memref<1x128xf32, #tpu.memory_space<vmem>>, vector<1x128xf32>
    %31 = vector.broadcast %30 : vector<1x128xf32> to vector<16x128xf32>
    %32 = arith.addf %29, %31 : vector<16x128xf32>
    %c0_16 = arith.constant 0 : index
    %c0_17 = arith.constant 0 : index
    %33 = vector.load %arg7[%c0_16, %c0_17] : memref<16x128xf32, #tpu.memory_space<vmem>>, vector<16x128xf32>
    tpu.vector_store %arg7[%c0_16, %c0_17], %32 {strides = array<i32>} : memref<16x128xf32, #tpu.memory_space<vmem>>, vector<16x128xf32>,
    return
  }
  func.func @transform_0(%arg0: i32) -> (i32, i32) {
    %c0_i32 = arith.constant 0 : i32
    %c0_i32_0 = arith.constant 0 : i32
    return %arg0, %c0_i32 : i32, i32
  }
  func.func @transform_1(%arg0: i32) -> (i32, i32) {
    %c0_i32 = arith.constant 0 : i32
    %c0_i32_0 = arith.constant 0 : i32
    %c0_i32_1 = arith.constant 0 : i32
    return %c0_i32, %c0_i32_0 : i32, i32
  }
  func.func @transform_2(%arg0: i32) -> (i32, i32) {
    %c0_i32 = arith.constant 0 : i32
    %c0_i32_0 = arith.constant 0 : i32
    %c0_i32_1 = arith.constant 0 : i32
    return %c0_i32, %c0_i32_0 : i32, i32
  }
  func.func @transform_3(%arg0: i32) -> (i32, i32) {
    %c0_i32 = arith.constant 0 : i32
    %c0_i32_0 = arith.constant 0 : i32
    return %arg0, %c0_i32 : i32, i32
  }
  func.func @transform_4(%arg0: i32) -> (i32, i32) {
    %c0_i32 = arith.constant 0 : i32
    %c0_i32_0 = arith.constant 0 : i32
    %c0_i32_1 = arith.constant 0 : i32
    return %c0_i32, %c0_i32_0 : i32, i32
  }
  func.func @transform_5(%arg0: i32) -> (i32, i32) {
    %c0_i32 = arith.constant 0 : i32
    %c0_i32_0 = arith.constant 0 : i32
    %c0_i32_1 = arith.constant 0 : i32
    return %c0_i32, %c0_i32_0 : i32, i32
  }
  func.func @transform_6(%arg0: i32) -> (i32, i32) {
    %c0_i32 = arith.constant 0 : i32
    %c0_i32_0 = arith.constant 0 : i32
    return %arg0, %c0_i32 : i32, i32
  }
}

module attributes {stable_mosaic.version = 11 : i64} {
  func.func @dense_kernel(%arg0: i32, %arg1: memref<16x128xf32, #tpu.memory_space<vmem>>, %arg2: memref<128x512xbf16, #tpu.memory_space<vmem>>, %arg3: memref<1x512xf32, #tpu.memory_space<vmem>>, %arg4: memref<16x512xf32, #tpu.memory_space<vmem>>) attributes {dimension_semantics = [#tpu.dimension_semantics<parallel>], iteration_bounds = array<i64: 1>, scalar_prefetch = 0 : i64, scratch_operands = 0 : i64, tpu.core_type = #tpu.core_type<tc>, window_params = [{transform_indices = @transform_0, window_bounds = array<i64: 16, 128>}, {pipeline_mode = #tpu.pipeline_mode<synchronous>, transform_indices = @transform_1, window_bounds = array<i64: 128, 512>}, {pipeline_mode = #tpu.pipeline_mode<synchronous>, transform_indices = @transform_2, window_bounds = array<i64: 1, 512>}, {transform_indices = @transform_3, window_bounds = array<i64: 16, 512>}]} {
    %c0 = arith.constant 0 : index
    %c0_0 = arith.constant 0 : index
    %0 = vector.load %arg1[%c0, %c0_0] : memref<16x128xf32, #tpu.memory_space<vmem>>, vector<16x128xf32>
    %1 = arith.truncf %0 : vector<16x128xf32> to vector<16x128xbf16>
    %c0_1 = arith.constant 0 : index
    %c0_2 = arith.constant 0 : index
    %2 = vector.load %arg2[%c0_1, %c0_2] : memref<128x512xbf16, #tpu.memory_space<vmem>>, vector<128x512xbf16>
    %cst = arith.constant dense<0.000000e+00> : vector<16x512xf32>
    %3 = tpu.matmul %1, %2, %cst {dimension_numbers = #tpu.dot_dimension_numbers<[1], [0], [0], [1], [0, 0, 1, 1], [], []>} : vector<16x128xbf16>, vector<128x512xbf16>, vector<16x512xf32> -> vector<16x512xf32>
    %c0_3 = arith.constant 0 : index
    %c0_4 = arith.constant 0 : index
    %4 = vector.load %arg3[%c0_3, %c0_4] : memref<1x512xf32, #tpu.memory_space<vmem>>, vector<1x512xf32>
    %5 = vector.broadcast %4 : vector<1x512xf32> to vector<16x512xf32>
    %6 = arith.addf %3, %5 : vector<16x512xf32>
    %cst_5 = arith.constant 5.000000e-01 : f32
    %7 = vector.broadcast %cst_5 : f32 to vector<16x512xf32>
    %8 = arith.mulf %7, %6 : vector<16x512xf32>
    %cst_6 = arith.constant 0.707106769 : f32
    %9 = vector.broadcast %cst_6 : f32 to vector<16x512xf32>
    %10 = arith.mulf %6, %9 : vector<16x512xf32>
    %cst_7 = arith.constant 0.000000e+00 : f32
    %11 = vector.broadcast %cst_7 : f32 to vector<16x512xf32>
    %12 = arith.cmpf olt, %10, %11 : vector<16x512xf32>
    %cst_8 = arith.constant -1.000000e+00 : f32
    %cst_9 = arith.constant 1.000000e+00 : f32
    %13 = vector.broadcast %cst_8 : f32 to vector<16x512xf32>
    %14 = vector.broadcast %cst_9 : f32 to vector<16x512xf32>
    %15 = arith.select %12, %13, %14 : vector<16x512xi1>, vector<16x512xf32>
    %16 = math.absf %10 : vector<16x512xf32>
    %cst_10 = arith.constant 0.327591091 : f32
    %17 = vector.broadcast %cst_10 : f32 to vector<16x512xf32>
    %18 = arith.mulf %17, %16 : vector<16x512xf32>
    %cst_11 = arith.constant 1.000000e+00 : f32
    %19 = vector.broadcast %cst_11 : f32 to vector<16x512xf32>
    %20 = arith.addf %19, %18 : vector<16x512xf32>
    %cst_12 = arith.constant 1.000000e+00 : f32
    %21 = vector.broadcast %cst_12 : f32 to vector<16x512xf32>
    %22 = arith.divf %21, %20 : vector<16x512xf32>
    %cst_13 = arith.constant 1.06140542 : f32
    %23 = vector.broadcast %cst_13 : f32 to vector<16x512xf32>
    %24 = arith.mulf %23, %22 : vector<16x512xf32>
    %cst_14 = arith.constant -1.45315206 : f32
    %25 = vector.broadcast %cst_14 : f32 to vector<16x512xf32>
    %26 = arith.addf %24, %25 : vector<16x512xf32>
    %27 = arith.mulf %26, %22 : vector<16x512xf32>
    %cst_15 = arith.constant 1.42141378 : f32
    %28 = vector.broadcast %cst_15 : f32 to vector<16x512xf32>
    %29 = arith.addf %27, %28 : vector<16x512xf32>
    %30 = arith.mulf %29, %22 : vector<16x512xf32>
    %cst_16 = arith.constant -0.284496725 : f32
    %31 = vector.broadcast %cst_16 : f32 to vector<16x512xf32>
    %32 = arith.addf %30, %31 : vector<16x512xf32>
    %33 = arith.mulf %32, %22 : vector<16x512xf32>
    %cst_17 = arith.constant 0.254829586 : f32
    %34 = vector.broadcast %cst_17 : f32 to vector<16x512xf32>
    %35 = arith.addf %33, %34 : vector<16x512xf32>
    %36 = arith.mulf %35, %22 : vector<16x512xf32>
    %cst_18 = arith.constant 0.000000e+00 : f32
    %37 = vector.broadcast %cst_18 : f32 to vector<16x512xf32>
    %38 = arith.subf %37, %16 : vector<16x512xf32>
    %39 = arith.mulf %38, %16 : vector<16x512xf32>
    %40 = math.exp %39 : vector<16x512xf32>
    %41 = arith.mulf %36, %40 : vector<16x512xf32>
    %cst_19 = arith.constant 1.000000e+00 : f32
    %42 = vector.broadcast %cst_19 : f32 to vector<16x512xf32>
    %43 = arith.subf %42, %41 : vector<16x512xf32>
    %44 = arith.mulf %15, %43 : vector<16x512xf32>
    %cst_20 = arith.constant 1.000000e+00 : f32
    %45 = vector.broadcast %cst_20 : f32 to vector<16x512xf32>
    %46 = arith.addf %45, %44 : vector<16x512xf32>
    %47 = arith.mulf %8, %46 : vector<16x512xf32>
    %c0_21 = arith.constant 0 : index
    %c0_22 = arith.constant 0 : index
    %48 = vector.load %arg4[%c0_21, %c0_22] : memref<16x512xf32, #tpu.memory_space<vmem>>, vector<16x512xf32>
    tpu.vector_store %arg4[%c0_21, %c0_22], %47 {strides = array<i32>} : memref<16x512xf32, #tpu.memory_space<vmem>>, vector<16x512xf32>,
    return
  }
  func.func @transform_0(%arg0: i32) -> (i32, i32) {
    %c0_i32 = arith.constant 0 : i32
    %c0_i32_0 = arith.constant 0 : i32
    return %arg0, %c0_i32 : i32, i32
  }
  func.func @transform_1(%arg0: i32) -> (i32, i32) {
    %c0_i32 = arith.constant 0 : i32
    %c0_i32_0 = arith.constant 0 : i32
    %c0_i32_1 = arith.constant 0 : i32
    return %c0_i32, %c0_i32_0 : i32, i32
  }
  func.func @transform_2(%arg0: i32) -> (i32, i32) {
    %c0_i32 = arith.constant 0 : i32
    %c0_i32_0 = arith.constant 0 : i32
    %c0_i32_1 = arith.constant 0 : i32
    return %c0_i32, %c0_i32_0 : i32, i32
  }
  func.func @transform_3(%arg0: i32) -> (i32, i32) {
    %c0_i32 = arith.constant 0 : i32
    %c0_i32_0 = arith.constant 0 : i32
    return %arg0, %c0_i32 : i32, i32
  }
}

module attributes {stable_mosaic.version = 11 : i64} {
  func.func @dense_residual_ln_kernel(%arg0: i32, %arg1: memref<16x512xf32, #tpu.memory_space<vmem>>, %arg2: memref<512x128xbf16, #tpu.memory_space<vmem>>, %arg3: memref<1x128xf32, #tpu.memory_space<vmem>>, %arg4: memref<16x128xf32, #tpu.memory_space<vmem>>, %arg5: memref<1x128xf32, #tpu.memory_space<vmem>>, %arg6: memref<1x128xf32, #tpu.memory_space<vmem>>, %arg7: memref<16x128xf32, #tpu.memory_space<vmem>>) attributes {dimension_semantics = [#tpu.dimension_semantics<parallel>], iteration_bounds = array<i64: 1>, scalar_prefetch = 0 : i64, scratch_operands = 0 : i64, tpu.core_type = #tpu.core_type<tc>, window_params = [{transform_indices = @transform_0, window_bounds = array<i64: 16, 512>}, {pipeline_mode = #tpu.pipeline_mode<synchronous>, transform_indices = @transform_1, window_bounds = array<i64: 512, 128>}, {pipeline_mode = #tpu.pipeline_mode<synchronous>, transform_indices = @transform_2, window_bounds = array<i64: 1, 128>}, {transform_indices = @transform_3, window_bounds = array<i64: 16, 128>}, {pipeline_mode = #tpu.pipeline_mode<synchronous>, transform_indices = @transform_4, window_bounds = array<i64: 1, 128>}, {pipeline_mode = #tpu.pipeline_mode<synchronous>, transform_indices = @transform_5, window_bounds = array<i64: 1, 128>}, {transform_indices = @transform_6, window_bounds = array<i64: 16, 128>}]} {
    %c0 = arith.constant 0 : index
    %c0_0 = arith.constant 0 : index
    %0 = vector.load %arg1[%c0, %c0_0] : memref<16x512xf32, #tpu.memory_space<vmem>>, vector<16x512xf32>
    %1 = arith.truncf %0 : vector<16x512xf32> to vector<16x512xbf16>
    %c0_1 = arith.constant 0 : index
    %c0_2 = arith.constant 0 : index
    %2 = vector.load %arg2[%c0_1, %c0_2] : memref<512x128xbf16, #tpu.memory_space<vmem>>, vector<512x128xbf16>
    %cst = arith.constant dense<0.000000e+00> : vector<16x128xf32>
    %3 = tpu.matmul %1, %2, %cst {dimension_numbers = #tpu.dot_dimension_numbers<[1], [0], [0], [1], [0, 0, 1, 1], [], []>} : vector<16x512xbf16>, vector<512x128xbf16>, vector<16x128xf32> -> vector<16x128xf32>
    %c0_3 = arith.constant 0 : index
    %c0_4 = arith.constant 0 : index
    %4 = vector.load %arg3[%c0_3, %c0_4] : memref<1x128xf32, #tpu.memory_space<vmem>>, vector<1x128xf32>
    %5 = vector.broadcast %4 : vector<1x128xf32> to vector<16x128xf32>
    %6 = arith.addf %3, %5 : vector<16x128xf32>
    %c0_5 = arith.constant 0 : index
    %c0_6 = arith.constant 0 : index
    %7 = vector.load %arg4[%c0_5, %c0_6] : memref<16x128xf32, #tpu.memory_space<vmem>>, vector<16x128xf32>
    %8 = arith.addf %6, %7 : vector<16x128xf32>
    %cst_7 = arith.constant dense<0.000000e+00> : vector<16xf32>
    %9 = vector.multi_reduction <add>, %8, %cst_7 [1] : vector<16x128xf32> to vector<16xf32>
    %10 = vector.shape_cast %9 : vector<16xf32> to vector<16x1xf32>
    %cst_8 = arith.constant 7.812500e-03 : f32
    %11 = vector.broadcast %cst_8 : f32 to vector<16x1xf32>
    %12 = arith.mulf %10, %11 : vector<16x1xf32>
    %13 = arith.mulf %8, %8 : vector<16x128xf32>
    %cst_9 = arith.constant dense<0.000000e+00> : vector<16xf32>
    %14 = vector.multi_reduction <add>, %13, %cst_9 [1] : vector<16x128xf32> to vector<16xf32>
    %15 = vector.shape_cast %14 : vector<16xf32> to vector<16x1xf32>
    %cst_10 = arith.constant 7.812500e-03 : f32
    %16 = vector.broadcast %cst_10 : f32 to vector<16x1xf32>
    %17 = arith.mulf %15, %16 : vector<16x1xf32>
    %18 = arith.mulf %12, %12 : vector<16x1xf32>
    %19 = arith.subf %17, %18 : vector<16x1xf32>
    %20 = vector.broadcast %12 : vector<16x1xf32> to vector<16x128xf32>
    %21 = arith.subf %8, %20 : vector<16x128xf32>
    %cst_11 = arith.constant 9.99999996E-13 : f32
    %22 = vector.broadcast %cst_11 : f32 to vector<16x1xf32>
    %23 = arith.addf %19, %22 : vector<16x1xf32>
    %24 = math.rsqrt %23 : vector<16x1xf32>
    %25 = vector.broadcast %24 : vector<16x1xf32> to vector<16x128xf32>
    %26 = arith.mulf %21, %25 : vector<16x128xf32>
    %c0_12 = arith.constant 0 : index
    %c0_13 = arith.constant 0 : index
    %27 = vector.load %arg5[%c0_12, %c0_13] : memref<1x128xf32, #tpu.memory_space<vmem>>, vector<1x128xf32>
    %28 = vector.broadcast %27 : vector<1x128xf32> to vector<16x128xf32>
    %29 = arith.mulf %26, %28 : vector<16x128xf32>
    %c0_14 = arith.constant 0 : index
    %c0_15 = arith.constant 0 : index
    %30 = vector.load %arg6[%c0_14, %c0_15] : memref<1x128xf32, #tpu.memory_space<vmem>>, vector<1x128xf32>
    %31 = vector.broadcast %30 : vector<1x128xf32> to vector<16x128xf32>
    %32 = arith.addf %29, %31 : vector<16x128xf32>
    %c0_16 = arith.constant 0 : index
    %c0_17 = arith.constant 0 : index
    %33 = vector.load %arg7[%c0_16, %c0_17] : memref<16x128xf32, #tpu.memory_space<vmem>>, vector<16x128xf32>
    tpu.vector_store %arg7[%c0_16, %c0_17], %32 {strides = array<i32>} : memref<16x128xf32, #tpu.memory_space<vmem>>, vector<16x128xf32>,
    return
  }
  func.func @transform_0(%arg0: i32) -> (i32, i32) {
    %c0_i32 = arith.constant 0 : i32
    %c0_i32_0 = arith.constant 0 : i32
    return %arg0, %c0_i32 : i32, i32
  }
  func.func @transform_1(%arg0: i32) -> (i32, i32) {
    %c0_i32 = arith.constant 0 : i32
    %c0_i32_0 = arith.constant 0 : i32
    %c0_i32_1 = arith.constant 0 : i32
    return %c0_i32, %c0_i32_0 : i32, i32
  }
  func.func @transform_2(%arg0: i32) -> (i32, i32) {
    %c0_i32 = arith.constant 0 : i32
    %c0_i32_0 = arith.constant 0 : i32
    %c0_i32_1 = arith.constant 0 : i32
    return %c0_i32, %c0_i32_0 : i32, i32
  }
  func.func @transform_3(%arg0: i32) -> (i32, i32) {
    %c0_i32 = arith.constant 0 : i32
    %c0_i32_0 = arith.constant 0 : i32
    return %arg0, %c0_i32 : i32, i32
  }
  func.func @transform_4(%arg0: i32) -> (i32, i32) {
    %c0_i32 = arith.constant 0 : i32
    %c0_i32_0 = arith.constant 0 : i32
    %c0_i32_1 = arith.constant 0 : i32
    return %c0_i32, %c0_i32_0 : i32, i32
  }
  func.func @transform_5(%arg0: i32) -> (i32, i32) {
    %c0_i32 = arith.constant 0 : i32
    %c0_i32_0 = arith.constant 0 : i32
    %c0_i32_1 = arith.constant 0 : i32
    return %c0_i32, %c0_i32_0 : i32, i32
  }
  func.func @transform_6(%arg0: i32) -> (i32, i32) {
    %c0_i32 = arith.constant 0 : i32
    %c0_i32_0 = arith.constant 0 : i32
    return %arg0, %c0_i32 : i32, i32
  }
}

module attributes {stable_mosaic.version = 11 : i64} {
  func.func @dense_residual_ln_kernel(%arg0: i32, %arg1: memref<16x512xf32, #tpu.memory_space<vmem>>, %arg2: memref<512x128xbf16, #tpu.memory_space<vmem>>, %arg3: memref<1x128xf32, #tpu.memory_space<vmem>>, %arg4: memref<16x128xf32, #tpu.memory_space<vmem>>, %arg5: memref<1x128xf32, #tpu.memory_space<vmem>>, %arg6: memref<1x128xf32, #tpu.memory_space<vmem>>, %arg7: memref<16x128xf32, #tpu.memory_space<vmem>>) attributes {dimension_semantics = [#tpu.dimension_semantics<parallel>], iteration_bounds = array<i64: 1>, scalar_prefetch = 0 : i64, scratch_operands = 0 : i64, tpu.core_type = #tpu.core_type<tc>, window_params = [{transform_indices = @transform_0, window_bounds = array<i64: 16, 512>}, {pipeline_mode = #tpu.pipeline_mode<synchronous>, transform_indices = @transform_1, window_bounds = array<i64: 512, 128>}, {pipeline_mode = #tpu.pipeline_mode<synchronous>, transform_indices = @transform_2, window_bounds = array<i64: 1, 128>}, {transform_indices = @transform_3, window_bounds = array<i64: 16, 128>}, {pipeline_mode = #tpu.pipeline_mode<synchronous>, transform_indices = @transform_4, window_bounds = array<i64: 1, 128>}, {pipeline_mode = #tpu.pipeline_mode<synchronous>, transform_indices = @transform_5, window_bounds = array<i64: 1, 128>}, {transform_indices = @transform_6, window_bounds = array<i64: 16, 128>}]} {
    %c0 = arith.constant 0 : index
    %c0_0 = arith.constant 0 : index
    %0 = vector.load %arg1[%c0, %c0_0] : memref<16x512xf32, #tpu.memory_space<vmem>>, vector<16x512xf32>
    %1 = arith.truncf %0 : vector<16x512xf32> to vector<16x512xbf16>
    %c0_1 = arith.constant 0 : index
    %c0_2 = arith.constant 0 : index
    %2 = vector.load %arg2[%c0_1, %c0_2] : memref<512x128xbf16, #tpu.memory_space<vmem>>, vector<512x128xbf16>
    %cst = arith.constant dense<0.000000e+00> : vector<16x128xf32>
    %3 = tpu.matmul %1, %2, %cst {dimension_numbers = #tpu.dot_dimension_numbers<[1], [0], [0], [1], [0, 0, 1, 1], [], []>} : vector<16x512xbf16>, vector<512x128xbf16>, vector<16x128xf32> -> vector<16x128xf32>
    %c0_3 = arith.constant 0 : index
    %c0_4 = arith.constant 0 : index
    %4 = vector.load %arg3[%c0_3, %c0_4] : memref<1x128xf32, #tpu.memory_space<vmem>>, vector<1x128xf32>
    %5 = vector.broadcast %4 : vector<1x128xf32> to vector<16x128xf32>
    %6 = arith.addf %3, %5 : vector<16x128xf32>
    %c0_5 = arith.constant 0 : index
    %c0_6 = arith.constant 0 : index
    %7 = vector.load %arg4[%c0_5, %c0_6] : memref<16x128xf32, #tpu.memory_space<vmem>>, vector<16x128xf32>
    %8 = arith.addf %6, %7 : vector<16x128xf32>
    %cst_7 = arith.constant dense<0.000000e+00> : vector<16xf32>
    %9 = vector.multi_reduction <add>, %8, %cst_7 [1] : vector<16x128xf32> to vector<16xf32>
    %10 = vector.shape_cast %9 : vector<16xf32> to vector<16x1xf32>
    %cst_8 = arith.constant 7.812500e-03 : f32
    %11 = vector.broadcast %cst_8 : f32 to vector<16x1xf32>
    %12 = arith.mulf %10, %11 : vector<16x1xf32>
    %13 = arith.mulf %8, %8 : vector<16x128xf32>
    %cst_9 = arith.constant dense<0.000000e+00> : vector<16xf32>
    %14 = vector.multi_reduction <add>, %13, %cst_9 [1] : vector<16x128xf32> to vector<16xf32>
    %15 = vector.shape_cast %14 : vector<16xf32> to vector<16x1xf32>
    %cst_10 = arith.constant 7.812500e-03 : f32
    %16 = vector.broadcast %cst_10 : f32 to vector<16x1xf32>
    %17 = arith.mulf %15, %16 : vector<16x1xf32>
    %18 = arith.mulf %12, %12 : vector<16x1xf32>
    %19 = arith.subf %17, %18 : vector<16x1xf32>
    %20 = vector.broadcast %12 : vector<16x1xf32> to vector<16x128xf32>
    %21 = arith.subf %8, %20 : vector<16x128xf32>
    %cst_11 = arith.constant 9.99999996E-13 : f32
    %22 = vector.broadcast %cst_11 : f32 to vector<16x1xf32>
    %23 = arith.addf %19, %22 : vector<16x1xf32>
    %24 = math.rsqrt %23 : vector<16x1xf32>
    %25 = vector.broadcast %24 : vector<16x1xf32> to vector<16x128xf32>
    %26 = arith.mulf %21, %25 : vector<16x128xf32>
    %c0_12 = arith.constant 0 : index
    %c0_13 = arith.constant 0 : index
    %27 = vector.load %arg5[%c0_12, %c0_13] : memref<1x128xf32, #tpu.memory_space<vmem>>, vector<1x128xf32>
    %28 = vector.broadcast %27 : vector<1x128xf32> to vector<16x128xf32>
    %29 = arith.mulf %26, %28 : vector<16x128xf32>
    %c0_14 = arith.constant 0 : index
    %c0_15 = arith.constant 0 : index
    %30 = vector.load %arg6[%c0_14, %c0_15] : memref<1x128xf32, #tpu.memory_space<vmem>>, vector<1x128xf32>
    %31 = vector.broadcast %30 : vector<1x128xf32> to vector<16x128xf32>
    %32 = arith.addf %29, %31 : vector<16x128xf32>
    %c0_16 = arith.constant 0 : index
    %c0_17 = arith.constant 0 : index
    %33 = vector.load %arg7[%c0_16, %c0_17] : memref<16x128xf32, #tpu.memory_space<vmem>>, vector<16x128xf32>
    tpu.vector_store %arg7[%c0_16, %c0_17], %32 {strides = array<i32>} : memref<16x128xf32, #tpu.memory_space<vmem>>, vector<16x128xf32>,
    return
  }
  func.func @transform_0(%arg0: i32) -> (i32, i32) {
    %c0_i32 = arith.constant 0 : i32
    %c0_i32_0 = arith.constant 0 : i32
    return %arg0, %c0_i32 : i32, i32
  }
  func.func @transform_1(%arg0: i32) -> (i32, i32) {
    %c0_i32 = arith.constant 0 : i32
    %c0_i32_0 = arith.constant 0 : i32
    %c0_i32_1 = arith.constant 0 : i32
    return %c0_i32, %c0_i32_0 : i32, i32
  }
  func.func @transform_2(%arg0: i32) -> (i32, i32) {
    %c0_i32 = arith.constant 0 : i32
    %c0_i32_0 = arith.constant 0 : i32
    %c0_i32_1 = arith.constant 0 : i32
    return %c0_i32, %c0_i32_0 : i32, i32
  }
  func.func @transform_3(%arg0: i32) -> (i32, i32) {
    %c0_i32 = arith.constant 0 : i32
    %c0_i32_0 = arith.constant 0 : i32
    return %arg0, %c0_i32 : i32, i32
  }
  func.func @transform_4(%arg0: i32) -> (i32, i32) {
    %c0_i32 = arith.constant 0 : i32
    %c0_i32_0 = arith.constant 0 : i32
    %c0_i32_1 = arith.constant 0 : i32
    return %c0_i32, %c0_i32_0 : i32, i32
  }
  func.func @transform_5(%arg0: i32) -> (i32, i32) {
    %c0_i32 = arith.constant 0 : i32
    %c0_i32_0 = arith.constant 0 : i32
    %c0_i32_1 = arith.constant 0 : i32
    return %c0_i32, %c0_i32_0 : i32, i32
  }
  func.func @transform_6(%arg0: i32) -> (i32, i32) {
    %c0_i32 = arith.constant 0 : i32
    %c0_i32_0 = arith.constant 0 : i32
    return %arg0, %c0_i32 : i32, i32
  }
}

</mosaic_0001>

<bundles_post_ra>
// kernel: bert_encoder.16
= control target key start
LH: loop header
LB: loop body
LE: loop exit
PB: predicated region body
PF: predicated region fallthrough
CT: control target
= control target key end

     0   :  { %s205_s1 = inlined_call_operand.vmem [shape: bf16[128,128], index: 1, kind: input, shape index: {}]   ;;  %s206_s2 = inlined_call_operand.vmem [shape: f32[1,128], index: 2, kind: input, shape index: {}]   ;;  %s207_s0 = inlined_call_operand.vmem [shape: f32[16,128], index: 0, kind: input, shape index: {}]   ;;  %s208_s3 = inlined_call_operand.vmem [shape: f32[16,128], index: 3, kind: output, shape index: {}]  }
   0x1   :  { %v144_v0 = vld [vmem:[%s205_s1 + $0x38] sm:$0xff]  ;;  %v143_v1 = vld [vmem:[%s205_s1 + $0x30] sm:$0xff]  ;;  %v142_v2 = vld [vmem:[%s205_s1 + $0x28] sm:$0xff] }
   0x2   :  { %85 = vmatpush.bf16.msra.mxu0 %v144_v0  ;;  %v141_v3 = vld [vmem:[%s205_s1 + $0x20] sm:$0xff]  ;;  %v140_v4 = vld [vmem:[%s205_s1 + $0x18] sm:$0xff]  ;;  %v139_v5 = vld [vmem:[%s205_s1 + $0x10] sm:$0xff] }
   0x3   :  { %v138_v6 = vld [vmem:[%s205_s1 + $0x8] sm:$0xff]  ;;  %v137_v7 = vld [vmem:[%s205_s1] sm:$0xff] }
   0x4   :  { %v14_v8 = vld [vmem:[%s207_s0] sm:$0xff]  ;;  %v15_v9 = vld [vmem:[%s207_s0 + $0x8] sm:$0xff] }
   0x5   :  { %v16_v10 = vpack.c.bf16 %v15_v9, %v14_v8  ;;  %v145_v11 = vld [vmem:[%s206_s2] ss:$0 sm:$0xff] }
   0x6   :  { %86 = vmatpush.bf16.msra.mxu0 %v143_v1 }
   0xa   :  { %87 = vmatpush.bf16.msra.mxu0 %v142_v2 }
   0xe   :  { %88 = vmatpush.bf16.msra.mxu0 %v141_v3 }
  0x12   :  { %89 = vmatpush.bf16.msra.mxu0 %v140_v4 }
  0x16   :  { %90 = vmatpush.bf16.msra.mxu0 %v139_v5 }
  0x1a   :  { %91 = vmatpush.bf16.msra.mxu0 %v138_v6 }
  0x1e   :  { %92 = vmatpush.bf16.msra.mxu0 %v137_v7 }
  0x21   :  { %93 = vmatmul.bf16.vlgmr.msra.gmra.mxu0 %v16_v10 }
  0x9e   :  { %v94_v12 = vpop.f32.mrf.mxu0 }
  0x9f   :  { %v95_v13 = vadd.f32 %v145_v11, %v94_v12 }
  0xa1   :  { %99 = vst [vmem:[%s208_s3] sm:$0xff] %v95_v13 }
  0xa6   :  { %v96_v14 = vpop.f32.mrf.mxu0 }
  0xa7   :  { %v97_v15 = vadd.f32 %v145_v11, %v96_v14 }
  0xa9   :  { %100 = vst [vmem:[%s208_s3 + $0x8] sm:$0xff] %v97_v15 }

// kernel: bert_encoder.17
= control target key start
LH: loop header
LB: loop body
LE: loop exit
PB: predicated region body
PF: predicated region fallthrough
CT: control target
= control target key end

     0   :  { %s649_s15 = smov 0   ;;  %s651_s16 = smov 0   ;;  %s721_s0 = inlined_call_operand.vmem [shape: f32[2,4,8,32], index: 0, kind: input, shape index: {}]   ;;  %s722_s1 = inlined_call_operand.vmem [shape: f32[2,4,8,32], index: 1, kind: input, shape index: {}]   ;;  %s723_s2 = inlined_call_operand.vmem [shape: f32[2,4,8,32], index: 2, kind: input, shape index: {}]   ;;  %s724_s3 = inlined_call_operand.vmem [shape: f32[2,1,8], index: 3, kind: input, shape index: {}]   ;;  %s725_s4 = inlined_call_operand.vmem [shape: f32[2,4,8,32], index: 4, kind: output, shape index: {}]  }
   0x1   :  { %s653_s17 = smov 0   ;;  %s655_s18 = smov 0  }
   0x2   :  { %s657_s19 = smov 0  }
   0x3 LB: > { %s23_s20 = sadd.s32 1, %s614_s17  ;;  %s26_s21 = sadd.s32 1, %s618_s18  ;;  %s622_s19 = sphi %s657_s19, %s14_s19   ;;  %s618_s18 = sphi %s655_s18, %s729_s18   ;;  %s614_s17 = sphi %s653_s17, %s728_s17   ;;  %s610_s16 = sphi %s651_s16, %s727_s16   ;;  %s606_s15 = sphi %s649_s15, %s726_s15  }
   0x4   : > { %p24_p0 = scmp.ge.s32.totalorder %s23_s20, 4  ;;  %p525_p1 = scmp.ge.s32.totalorder %s622_s19, 1 }
   0x5   : > { %p219_p2 = scmp.lt.s32.totalorder %s622_s19, 9 }
   0x6   : > { %s731_s20 = smov (%p24_p0, %s23_s20), 0  ;;  %s733_s21 = smov (!%p24_p0, %s26_s21), %s618_s18 }
   0x7   : > { %p220_p3 = pnand %p525_p1, %p219_p2  ;;  %p28_p4 = scmp.ge.s32.totalorder %s733_s21, 2 }
   0x8   : > { %p270_p5 = scmp.lt.s32.totalorder (!%p220_p3), %s610_s16, 1  ;;  %p272_p6 = scmp.lt.s32.totalorder (!%p220_p3), %s606_s15, 3 }
   0x9   : > { %s735_s21 = smov (%p28_p4, %s733_s21), 0  ;;  %223 = sbr.rel (%p220_p3) target bundleno = 544 (0x220), region = 36 }
   0xe   : > { %s737_s16 = smov (!%p270_p5, %s610_s16), 1  ;;  %s739_s15 = smov (!%p272_p6, %s606_s15), 3  ;;  %vm308_vm0 = vcmask 261120   ;;  %vm341_vm1 = vcmask 64512  }
   0xf   : > { %s526_s22 = sshll.u32 %s737_s16, 2  ;;  %s296_s7 = scalar_lea.vmem %s724_s3, %s737_s16 }
  0x10   : > { %s275_s23 = sadd.s32 %s526_s22, %s739_s15  ;;  %v579_v2 = vld [vmem:[%s296_s7] ss:$0 sm:$0xff] }
  0x11   : > { %s679_s24 = sshll.u32 %s275_s23, 3 }
  0x12   : > { %s285_s27 = scalar_lea.vmem %s722_s1, %s679_s24  ;;  %s277_s30 = scalar_lea.vmem %s721_s0, %s679_s24 }
  0x13   : > { %v306_v0 = vld [vmem:[%s285_s27] sm:$0xff]  ;;  %s293_s10 = scalar_lea.vmem %s723_s2, %s679_s24  ;;  %s304_s13 = scalar_lea.vmem %s725_s4, %s679_s24 }
  0x14   : > { %534 = vmatpush.xpose.msk.msra.mxu0 %vm308_vm0, %v306_v0  ;;  %v305_v1 = vld [vmem:[%s277_s30] sm:$0xff] }
  0x15   : > { %v307_v12 = vld [vmem:[%s293_s10] sm:$0xff] }
  0x16   : > { %384 = vmatpush.msra.mxu1 %v307_v12 }
  0x17   : > { %535 = vmatmul.msk.f32.vlgmr.msra.gmra.mxu0 %vm308_vm0, %v305_v1 }
  0x94   : > { %v332_v3 = vpop.f32.mrf.mxu0 }
  0x95   : > { %v335_v4 = vmul.f32 0.17677669, %v332_v3 }
  0x97   : > { %v340_v5 = vadd.f32 %v579_v2, %v335_v4 }
  0x99   : > { %v342_v6 = vsel %vm341_vm1, %v340_v5, -inf }
  0x9a   : > { %343 = vmax.xlane.f32.xlu0 %v342_v6 }
 0x10d   : > { %v344_v7 = vpop.xlane.xlu0 %343 }
 0x10e   : > { %v345_v8 = vsub.f32 %v340_v5, %v344_v7 }
 0x110   : > { %v346_v9 = vmul.f32 1.442695, %v345_v8 }
 0x112   : > { %580 = vpow2.f32 %v346_v9 }
 0x118   : > { %v581_v10 = vpop.eup %580 }
 0x119   : > { %v348_v11 = vsel %vm341_vm1, %v581_v10, 0.0 }
 0x11a   : > { %349 = vadd.xlane.f32.xlu0 %v348_v11 }
 0x18d   : > { %v350_v13 = vpop.xlane.xlu0 %349 }
 0x18e   : > { %582 = vrcp.f32 %v350_v13  ;;  %v362_v17 = vand.u32 2147483648, %v350_v13  ;;  %v360_v19 = vand.u32 2147483647, %v350_v13  ;;  %vm356_vm3 = vweird.f32 %v350_v13 }
 0x190   : > { %v363_v21 = vor.u32 1.1754944e-38, %v362_v17  ;;  %vm361_vm5 = vcmp.eq.f32.partialorder %v360_v19, 8.507059e+37 }
 0x194   : > { %v583_v14 = vpop.eup %582 }
 0x195   : > { %v352_v15 = vmul.f32 %v583_v14, %v350_v13  ;;  %vm357_vm2 = vweird.f32 %v583_v14 }
 0x196   : > { %vm358_vm4 = vmor %vm356_vm3, %vm357_vm2 }
 0x197   : > { %v353_v16 = vsub.f32 1.0, %v352_v15 }
 0x199   : > { %v354_v18 = vmul.f32 %v583_v14, %v353_v16 }
 0x19b   : > { %v355_v20 = vadd.f32 %v583_v14, %v354_v18 }
 0x19d   : > { %v359_v22 = vsel %vm358_vm4, %v583_v14, %v355_v20 }
 0x19e   : > { %v364_v23 = vsel %vm361_vm5, %v363_v21, %v359_v22 }
 0x19f   : > { %v365_v24 = vmul.f32 %v581_v10, %v364_v23 }
 0x1a1   : > { %536 = vmatmul.msk.f32.vlgmr.msra.gmra.mxu1 %vm341_vm1, %v365_v24 }
 0x21e   : > { %v386_v25 = vpop.f32.mrf.mxu1 }
 0x21f   : > { %389 = vst.msk [vmem:[%s304_s13] sm:$0xff] %vm308_vm0, %v386_v25 }
 0x220 PF: > { %s14_s19 = sadd.s32 1, %s622_s19   ;;  %s726_s15 = smov %s614_s17 }
 0x221   : > { %p11_p7 = scmp.ge.s32.totalorder %s14_s19, 10   ;;  %s727_s16 = smov %s618_s18 }
 0x222   : > { %s728_s17 = smov %s731_s20  ;;  %s729_s18 = smov %s735_s21 }
 0x223   :  { %13 = sbr.rel (!%p11_p7) target bundleno = 3 (0x3), region = 75 }

// kernel: bert_encoder.18
= control target key start
LH: loop header
LB: loop body
LE: loop exit
PB: predicated region body
PF: predicated region fallthrough
CT: control target
= control target key end

     0   :  { %s307_s1 = inlined_call_operand.vmem [shape: bf16[128,128], index: 1, kind: input, shape index: {}]   ;;  %s308_s2 = inlined_call_operand.vmem [shape: f32[1,128], index: 2, kind: input, shape index: {}]   ;;  %s309_s0 = inlined_call_operand.vmem [shape: f32[16,128], index: 0, kind: input, shape index: {}]   ;;  %s310_s4 = inlined_call_operand.vmem [shape: f32[1,128], index: 4, kind: input, shape index: {}]   ;;  %s311_s5 = inlined_call_operand.vmem [shape: f32[1,128], index: 5, kind: input, shape index: {}]   ;;  %s312_s3 = inlined_call_operand.vmem [shape: f32[16,128], index: 3, kind: input, shape index: {}]   ;;  %s313_s6 = inlined_call_operand.vmem [shape: f32[16,128], index: 6, kind: output, shape index: {}]  }
   0x1   :  { %v213_v0 = vld [vmem:[%s307_s1 + $0x38] sm:$0xff]  ;;  %v212_v1 = vld [vmem:[%s307_s1 + $0x30] sm:$0xff]  ;;  %v211_v2 = vld [vmem:[%s307_s1 + $0x28] sm:$0xff] }
   0x2   :  { %94 = vmatpush.bf16.msra.mxu0 %v213_v0  ;;  %v210_v3 = vld [vmem:[%s307_s1 + $0x20] sm:$0xff]  ;;  %v209_v4 = vld [vmem:[%s307_s1 + $0x18] sm:$0xff]  ;;  %v208_v5 = vld [vmem:[%s307_s1 + $0x10] sm:$0xff] }
   0x3   :  { %v207_v6 = vld [vmem:[%s307_s1 + $0x8] sm:$0xff]  ;;  %v206_v7 = vld [vmem:[%s307_s1] sm:$0xff] }
   0x4   :  { %v23_v8 = vld [vmem:[%s309_s0] sm:$0xff]  ;;  %v24_v9 = vld [vmem:[%s309_s0 + $0x8] sm:$0xff] }
   0x5   :  { %v25_v10 = vpack.c.bf16 %v24_v9, %v23_v8  ;;  %v214_v11 = vld [vmem:[%s308_s2] ss:$0 sm:$0xff]  ;;  %v109_v18 = vld [vmem:[%s312_s3 + $0x8] sm:$0xff] }
   0x6   :  { %95 = vmatpush.bf16.msra.mxu0 %v212_v1  ;;  %v108_v13 = vld [vmem:[%s312_s3] sm:$0xff] }
   0x7   :  { %v215_v45 = vld [vmem:[%s310_s4] ss:$0 sm:$0xff] }
   0x8   :  { %v216_v48 = vld [vmem:[%s311_s5] ss:$0 sm:$0xff] }
   0xa   :  { %96 = vmatpush.bf16.msra.mxu0 %v211_v2 }
   0xe   :  { %97 = vmatpush.bf16.msra.mxu0 %v210_v3 }
  0x12   :  { %98 = vmatpush.bf16.msra.mxu0 %v209_v4 }
  0x16   :  { %99 = vmatpush.bf16.msra.mxu0 %v208_v5 }
  0x1a   :  { %100 = vmatpush.bf16.msra.mxu0 %v207_v6 }
  0x1e   :  { %101 = vmatpush.bf16.msra.mxu0 %v206_v7 }
  0x21   :  { %102 = vmatmul.bf16.vlgmr.msra.gmra.mxu0 %v25_v10 }
  0x9e   :  { %v103_v12 = vpop.f32.mrf.mxu0 }
  0x9f   :  { %v104_v14 = vadd.f32 %v214_v11, %v103_v12 }
  0xa1   :  { %v110_v15 = vadd.f32 %v108_v13, %v104_v14 }
  0xa3   :  { %112 = vadd.xlane.f32.xlu0 %v110_v15  ;;  %v118_v16 = vmul.f32 %v110_v15, %v110_v15 }
  0xa5   :  { %120 = vadd.xlane.f32.xlu1 %v118_v16 }
  0xa6   :  { %v105_v17 = vpop.f32.mrf.mxu0 }
  0xa7   :  { %v106_v19 = vadd.f32 %v214_v11, %v105_v17 }
  0xa9   :  { %v111_v20 = vadd.f32 %v109_v18, %v106_v19 }
  0xab   :  { %114 = vadd.xlane.f32.xlu0 %v111_v20  ;;  %v119_v21 = vmul.f32 %v111_v20, %v111_v20 }
  0xad   :  { %122 = vadd.xlane.f32.xlu1 %v119_v21 }
 0x116   :  { %v113_v22 = vpop.xlane.xlu0 %112 }
 0x117   :  { %v116_v23 = vmul.f32 0.0078125, %v113_v22 }
 0x118   :  { %v121_v24 = vpop.xlane.xlu1 %120 }
 0x119   :  { %v126_v25 = vmul.f32 %v116_v23, %v116_v23  ;;  %v124_v26 = vmul.f32 0.0078125, %v121_v24  ;;  %v130_v44 = vsub.f32 %v110_v15, %v116_v23 }
 0x11b   :  { %v128_v27 = vsub.f32 %v124_v26, %v126_v25 }
 0x11d   :  { %v132_v28 = vadd.f32 1e-12, %v128_v27 }
 0x11e   :  { %v115_v29 = vpop.xlane.xlu0 %114 }
 0x11f   :  { %217 = vrsqrt.f32 %v132_v28  ;;  %v117_v30 = vmul.f32 0.0078125, %v115_v29  ;;  %vm140_vm1 = vweird.f32 %v132_v28 }
 0x120   :  { %v123_v31 = vpop.xlane.xlu1 %122 }
 0x121   :  { %v127_v32 = vmul.f32 %v117_v30, %v117_v30  ;;  %v125_v33 = vmul.f32 0.0078125, %v123_v31  ;;  %v131_v55 = vsub.f32 %v111_v20, %v117_v30 }
 0x123   :  { %v129_v34 = vsub.f32 %v125_v33, %v127_v32 }
 0x125   :  { %v218_v35 = vpop.eup %217  ;;  %v133_v36 = vadd.f32 1e-12, %v129_v34 }
 0x126   :  { %v135_v37 = vmul.f32 %v218_v35, %v132_v28  ;;  %vm141_vm0 = vweird.f32 %v218_v35 }
 0x127   :  { %219 = vrsqrt.f32 %v133_v36  ;;  %vm142_vm2 = vmor %vm140_vm1, %vm141_vm0  ;;  %vm150_vm4 = vweird.f32 %v133_v36 }
 0x128   :  { %v136_v38 = vmul.f32 %v218_v35, %v135_v37 }
 0x12a   :  { %v137_v39 = vmul.f32 0.5, %v136_v38 }
 0x12c   :  { %v138_v40 = vsub.f32 1.5, %v137_v39 }
 0x12d   :  { %v220_v41 = vpop.eup %219 }
 0x12e   :  { %v139_v42 = vmul.f32 %v218_v35, %v138_v40  ;;  %v145_v43 = vmul.f32 %v220_v41, %v133_v36  ;;  %vm151_vm3 = vweird.f32 %v220_v41 }
 0x12f   :  { %vm152_vm5 = vmor %vm150_vm4, %vm151_vm3 }
 0x130   :  { %v143_v46 = vsel %vm142_vm2, %v218_v35, %v139_v42  ;;  %v146_v47 = vmul.f32 %v220_v41, %v145_v43 }
 0x131   :  { %v154_v49 = vmul.f32 %v143_v46, %v130_v44 }
 0x132   :  { %v147_v50 = vmul.f32 0.5, %v146_v47 }
 0x133   :  { %v160_v51 = vmul.f32 %v215_v45, %v154_v49 }
 0x134   :  { %v148_v52 = vsub.f32 1.5, %v147_v50 }
 0x135   :  { %v166_v53 = vadd.f32 %v216_v48, %v160_v51 }
 0x136   :  { %v149_v54 = vmul.f32 %v220_v41, %v148_v52 }
 0x137   :  { %168 = vst [vmem:[%s313_s6] sm:$0xff] %v166_v53 }
 0x138   :  { %v153_v56 = vsel %vm152_vm5, %v220_v41, %v149_v54 }
 0x139   :  { %v155_v57 = vmul.f32 %v153_v56, %v131_v55 }
 0x13b   :  { %v161_v58 = vmul.f32 %v215_v45, %v155_v57 }
 0x13d   :  { %v167_v59 = vadd.f32 %v216_v48, %v161_v58 }
 0x13f   :  { %169 = vst [vmem:[%s313_s6 + $0x8] sm:$0xff] %v167_v59 }

// kernel: bert_encoder.19
= control target key start
LH: loop header
LB: loop body
LE: loop exit
PB: predicated region body
PF: predicated region fallthrough
CT: control target
= control target key end

     0   :  { %s1278_s1 = inlined_call_operand.vmem [shape: bf16[128,512], index: 1, kind: input, shape index: {}]   ;;  %s1279_s0 = inlined_call_operand.vmem [shape: f32[16,128], index: 0, kind: input, shape index: {}]   ;;  %s1280_s2 = inlined_call_operand.vmem [shape: f32[1,512], index: 2, kind: input, shape index: {}]   ;;  %s1281_s3 = inlined_call_operand.vmem [shape: f32[16,512], index: 3, kind: output, shape index: {}]  }
   0x1   :  { %v721_v0 = vld [vmem:[%s1278_s1 + $0xe0] sm:$0xf]  ;;  %v765_v1 = vld [vmem:[%s1278_s1 + $0xec] sm:$0xf0]  ;;  %v763_v2 = vld [vmem:[%s1278_s1 + $0xe4] sm:$0xf] }
   0x2   :  { %v722_v3 = vor.u32 %v765_v1, %v721_v0  ;;  %v723_v4 = vld [vmem:[%s1278_s1 + $0xf0] sm:$0xf0]  ;;  %v729_v5 = vld [vmem:[%s1278_s1 + $0xe8] sm:$0xf]  ;;  %v766_v6 = vld [vmem:[%s1278_s1 + $0xf4] sm:$0xf0] }
   0x3   :  { %v726_v7 = vor.u32 %v763_v2, %v723_v4  ;;  %v730_v8 = vor.u32 %v766_v6, %v729_v5  ;;  %v764_v9 = vld [vmem:[%s1278_s1 + $0xec] sm:$0xf]  ;;  %v731_v10 = vld [vmem:[%s1278_s1 + $0xf8] sm:$0xf0]  ;;  %v705_v11 = vld [vmem:[%s1278_s1 + $0xc0] sm:$0xf] }
   0x4   :  { %219 = vmatpush.bf16.msra.mxu0 %v722_v3  ;;  %v734_v12 = vor.u32 %v764_v9, %v731_v10  ;;  %v761_v13 = vld [vmem:[%s1278_s1 + $0xcc] sm:$0xf0]  ;;  %v759_v14 = vld [vmem:[%s1278_s1 + $0xc4] sm:$0xf]  ;;  %v707_v15 = vld [vmem:[%s1278_s1 + $0xd0] sm:$0xf0] }
   0x5   :  { %233 = vmatpush.bf16.msra.mxu1 %v726_v7  ;;  %247 = vmatpush.bf16.msra.mxu2 %v730_v8  ;;  %v706_v16 = vor.u32 %v761_v13, %v705_v11  ;;  %v710_v17 = vor.u32 %v759_v14, %v707_v15  ;;  %v713_v18 = vld [vmem:[%s1278_s1 + $0xc8] sm:$0xf]  ;;  %v762_v19 = vld [vmem:[%s1278_s1 + $0xd4] sm:$0xf0]  ;;  %v760_v20 = vld [vmem:[%s1278_s1 + $0xcc] sm:$0xf] }
   0x6   :  { %261 = vmatpush.bf16.msra.mxu3 %v734_v12  ;;  %v714_v21 = vor.u32 %v762_v19, %v713_v18  ;;  %v715_v22 = vld [vmem:[%s1278_s1 + $0xd8] sm:$0xf0]  ;;  %v689_v23 = vld [vmem:[%s1278_s1 + $0xa0] sm:$0xf]  ;;  %v757_v24 = vld [vmem:[%s1278_s1 + $0xac] sm:$0xf0] }
   0x7   :  { %v718_v25 = vor.u32 %v760_v20, %v715_v22  ;;  %v755_v26 = vld [vmem:[%s1278_s1 + $0xa4] sm:$0xf]  ;;  %v691_v27 = vld [vmem:[%s1278_s1 + $0xb0] sm:$0xf0]  ;;  %v697_v28 = vld [vmem:[%s1278_s1 + $0xa8] sm:$0xf]  ;;  %v690_v29 = vor.u32 %v757_v24, %v689_v23 }
   0x8   :  { %220 = vmatpush.bf16.msra.mxu0 %v706_v16  ;;  %v758_v30 = vld [vmem:[%s1278_s1 + $0xb4] sm:$0xf0]  ;;  %v756_v31 = vld [vmem:[%s1278_s1 + $0xac] sm:$0xf]  ;;  %v699_v32 = vld [vmem:[%s1278_s1 + $0xb8] sm:$0xf0]  ;;  %v694_v33 = vor.u32 %v755_v26, %v691_v27 }
   0x9   :  { %234 = vmatpush.bf16.msra.mxu1 %v710_v17  ;;  %248 = vmatpush.bf16.msra.mxu2 %v714_v21  ;;  %v698_v34 = vor.u32 %v758_v30, %v697_v28  ;;  %v673_v35 = vld [vmem:[%s1278_s1 + $0x80] sm:$0xf]  ;;  %v753_v36 = vld [vmem:[%s1278_s1 + $0x8c] sm:$0xf0]  ;;  %v751_v37 = vld [vmem:[%s1278_s1 + $0x84] sm:$0xf]  ;;  %v702_v38 = vor.u32 %v756_v31, %v699_v32 }
   0xa   :  { %262 = vmatpush.bf16.msra.mxu3 %v718_v25  ;;  %v675_v39 = vld [vmem:[%s1278_s1 + $0x90] sm:$0xf0]  ;;  %v681_v40 = vld [vmem:[%s1278_s1 + $0x88] sm:$0xf]  ;;  %v754_v41 = vld [vmem:[%s1278_s1 + $0x94] sm:$0xf0]  ;;  %v674_v44 = vor.u32 %v753_v36, %v673_v35 }
   0xb   :  { %v752_v42 = vld [vmem:[%s1278_s1 + $0x8c] sm:$0xf]  ;;  %v683_v43 = vld [vmem:[%s1278_s1 + $0x98] sm:$0xf0]  ;;  %v678_v45 = vor.u32 %v751_v37, %v675_v39  ;;  %v682_v46 = vor.u32 %v754_v41, %v681_v40  ;;  %v657_v47 = vld [vmem:[%s1278_s1 + $0x60] sm:$0xf] }
   0xc   :  { %221 = vmatpush.bf16.msra.mxu0 %v690_v29  ;;  %v749_v48 = vld [vmem:[%s1278_s1 + $0x6c] sm:$0xf0]  ;;  %v747_v49 = vld [vmem:[%s1278_s1 + $0x64] sm:$0xf]  ;;  %v686_v50 = vor.u32 %v752_v42, %v683_v43  ;;  %v659_v51 = vld [vmem:[%s1278_s1 + $0x70] sm:$0xf0] }
   0xd   :  { %235 = vmatpush.bf16.msra.mxu1 %v694_v33  ;;  %249 = vmatpush.bf16.msra.mxu2 %v698_v34  ;;  %v665_v52 = vld [vmem:[%s1278_s1 + $0x68] sm:$0xf]  ;;  %v750_v53 = vld [vmem:[%s1278_s1 + $0x74] sm:$0xf0]  ;;  %v748_v54 = vld [vmem:[%s1278_s1 + $0x6c] sm:$0xf]  ;;  %v658_v56 = vor.u32 %v749_v48, %v657_v47  ;;  %v662_v57 = vor.u32 %v747_v49, %v659_v51 }
   0xe   :  { %263 = vmatpush.bf16.msra.mxu3 %v702_v38  ;;  %v667_v55 = vld [vmem:[%s1278_s1 + $0x78] sm:$0xf0]  ;;  %v666_v58 = vor.u32 %v750_v53, %v665_v52  ;;  %v641_v59 = vld [vmem:[%s1278_s1 + $0x40] sm:$0xf]  ;;  %v745_v60 = vld [vmem:[%s1278_s1 + $0x4c] sm:$0xf0] }
   0xf   :  { %v743_v61 = vld [vmem:[%s1278_s1 + $0x44] sm:$0xf]  ;;  %v670_v62 = vor.u32 %v748_v54, %v667_v55  ;;  %v643_v63 = vld [vmem:[%s1278_s1 + $0x50] sm:$0xf0]  ;;  %v649_v0 = vld [vmem:[%s1278_s1 + $0x48] sm:$0xf]  ;;  %v642_v4 = vor.u32 %v745_v60, %v641_v59 }
  0x10   :  { %222 = vmatpush.bf16.msra.mxu0 %v674_v44  ;;  %v746_v1 = vld [vmem:[%s1278_s1 + $0x54] sm:$0xf0]  ;;  %v744_v2 = vld [vmem:[%s1278_s1 + $0x4c] sm:$0xf]  ;;  %v651_v3 = vld [vmem:[%s1278_s1 + $0x58] sm:$0xf0]  ;;  %v646_v5 = vor.u32 %v743_v61, %v643_v63 }
  0x11   :  { %236 = vmatpush.bf16.msra.mxu1 %v678_v45  ;;  %250 = vmatpush.bf16.msra.mxu2 %v682_v46  ;;  %v650_v6 = vor.u32 %v746_v1, %v649_v0  ;;  %v625_v7 = vld [vmem:[%s1278_s1 + $0x20] sm:$0xf]  ;;  %v741_v8 = vld [vmem:[%s1278_s1 + $0x2c] sm:$0xf0]  ;;  %v739_v9 = vld [vmem:[%s1278_s1 + $0x24] sm:$0xf]  ;;  %v654_v10 = vor.u32 %v744_v2, %v651_v3 }
  0x12   :  { %264 = vmatpush.bf16.msra.mxu3 %v686_v50  ;;  %v627_v11 = vld [vmem:[%s1278_s1 + $0x30] sm:$0xf0]  ;;  %v633_v12 = vld [vmem:[%s1278_s1 + $0x28] sm:$0xf]  ;;  %v742_v13 = vld [vmem:[%s1278_s1 + $0x34] sm:$0xf0]  ;;  %v626_v16 = vor.u32 %v741_v8, %v625_v7 }
  0x13   :  { %v740_v14 = vld [vmem:[%s1278_s1 + $0x2c] sm:$0xf]  ;;  %v635_v15 = vld [vmem:[%s1278_s1 + $0x38] sm:$0xf0]  ;;  %v630_v17 = vor.u32 %v739_v9, %v627_v11  ;;  %v634_v18 = vor.u32 %v742_v13, %v633_v12  ;;  %v609_v19 = vld [vmem:[%s1278_s1] sm:$0xf] }
  0x14   :  { %223 = vmatpush.bf16.msra.mxu0 %v658_v56  ;;  %v737_v20 = vld [vmem:[%s1278_s1 + $0xc] sm:$0xf0]  ;;  %v735_v21 = vld [vmem:[%s1278_s1 + $0x4] sm:$0xf]  ;;  %v638_v22 = vor.u32 %v740_v14, %v635_v15  ;;  %v611_v23 = vld [vmem:[%s1278_s1 + $0x10] sm:$0xf0] }
  0x15   :  { %237 = vmatpush.bf16.msra.mxu1 %v662_v57  ;;  %251 = vmatpush.bf16.msra.mxu2 %v666_v58  ;;  %v617_v24 = vld [vmem:[%s1278_s1 + $0x8] sm:$0xf]  ;;  %v738_v25 = vld [vmem:[%s1278_s1 + $0x14] sm:$0xf0]  ;;  %v736_v26 = vld [vmem:[%s1278_s1 + $0xc] sm:$0xf]  ;;  %v610_v28 = vor.u32 %v737_v20, %v609_v19  ;;  %v614_v31 = vor.u32 %v735_v21, %v611_v23 }
  0x16   :  { %265 = vmatpush.bf16.msra.mxu3 %v670_v62  ;;  %v619_v27 = vld [vmem:[%s1278_s1 + $0x18] sm:$0xf0]  ;;  %v14_v29 = vld [vmem:[%s1279_s0] sm:$0xff]  ;;  %v15_v30 = vld [vmem:[%s1279_s0 + $0x8] sm:$0xff]  ;;  %v618_v32 = vor.u32 %v738_v25, %v617_v24  ;;  %v800_v2 = vmov 1.0  }
  0x17   :  { %v622_v33 = vor.u32 %v736_v26, %v619_v27  ;;  %v16_v34 = vpack.c.bf16 %v15_v30, %v14_v29  ;;  %v1022_v35 = vld [vmem:[%s1280_s2] sm:$0xf] }
  0x18   :  { %224 = vmatpush.bf16.msra.mxu0 %v642_v4  ;;  %v51_v36 = vperm.slane %v1022_v35, 0  ;;  %v52_v37 = vperm.slane %v1022_v35, 1  ;;  %v53_v44 = vperm.slane %v1022_v35, 2  ;;  %v54_v51 = vperm.slane %v1022_v35, 3 }
  0x19   :  { %238 = vmatpush.bf16.msra.mxu1 %v646_v5  ;;  %252 = vmatpush.bf16.msra.mxu2 %v650_v6 }
  0x1a   :  { %266 = vmatpush.bf16.msra.mxu3 %v654_v10 }
  0x1c   :  { %225 = vmatpush.bf16.msra.mxu0 %v626_v16 }
  0x1d   :  { %239 = vmatpush.bf16.msra.mxu1 %v630_v17  ;;  %253 = vmatpush.bf16.msra.mxu2 %v634_v18 }
  0x1e   :  { %267 = vmatpush.bf16.msra.mxu3 %v638_v22 }
  0x20   :  { %226 = vmatpush.bf16.msra.mxu0 %v610_v28 }
  0x21   :  { %240 = vmatpush.bf16.msra.mxu1 %v614_v31  ;;  %254 = vmatpush.bf16.msra.mxu2 %v618_v32 }
  0x22   :  { %268 = vmatpush.bf16.msra.mxu3 %v622_v33 }
  0x23   :  { %227 = vmatmul.bf16.vlgmr.msra.gmra.mxu0 %v16_v34 }
  0x24   :  { %241 = vmatmul.bf16.vlgmr.msra.gmra.mxu1 %v16_v34  ;;  %255 = vmatmul.bf16.vlgmr.msra.gmra.mxu2 %v16_v34 }
  0x25   :  { %269 = vmatmul.bf16.vlgmr.msra.gmra.mxu3 %v16_v34 }
  0xa0   :  { %v228_v38 = vpop.f32.mrf.mxu0 }
  0xa1   :  { %v229_v39 = vadd.f32 %v228_v38, %v51_v36  ;;  %v242_v40 = vpop.f32.mrf.mxu1 }
  0xa2   :  { %v243_v41 = vadd.f32 %v242_v40, %v52_v37 }
  0xa3   :  { %v283_v42 = vmul.f32 0.70710677, %v229_v39  ;;  %v1048_v1 = vmul.f32 0.5, %v229_v39 }
  0xa4   :  { %v284_v43 = vmul.f32 0.70710677, %v243_v41  ;;  %v1053_v4 = vmul.f32 0.5, %v243_v41 }
  0xa5   :  { %v307_v45 = vand.u32 2147483647, %v283_v42  ;;  %vm291_vm0 = vcmp.lt.f32.partialorder %v283_v42, 0.0 }
  0xa6   :  { %v308_v46 = vand.u32 2147483647, %v284_v43  ;;  %vm292_vm1 = vcmp.lt.f32.partialorder %v284_v43, 0.0  ;;  %v1051_v3 = vsel %vm291_vm0, -1.0, %v800_v2 }
  0xa7   :  { %v315_v47 = vmul.f32 0.3275911, %v307_v45  ;;  %v256_v48 = vpop.f32.mrf.mxu2  ;;  %v523_v56 = vsub.f32 0.0, %v307_v45  ;;  %v1056_v5 = vsel %vm292_vm1, -1.0, %v800_v2 }
  0xa8   :  { %v316_v49 = vmul.f32 0.3275911, %v308_v46  ;;  %v1031_v50 = vadd.f32 %v256_v48, %v53_v44  ;;  %v270_v53 = vpop.f32.mrf.mxu3  ;;  %v524_v58 = vsub.f32 0.0, %v308_v46  ;;  %v230_v60 = vpop.f32.mrf.mxu0 }
  0xa9   :  { %v323_v52 = vadd.f32 1.0, %v315_v47  ;;  %v1039_v57 = vadd.f32 %v270_v53, %v54_v51  ;;  %v531_v61 = vmul.f32 %v523_v56, %v307_v45  ;;  %v1060_v10 = vadd.f32 %v230_v60, %v51_v36  ;;  %v244_v26 = vpop.f32.mrf.mxu1 }
  0xaa   :  { %v324_v54 = vadd.f32 1.0, %v316_v49  ;;  %v1035_v55 = vmul.f32 0.70710677, %v1031_v50  ;;  %v532_v8 = vmul.f32 %v524_v58, %v308_v46  ;;  %v1090_v40 = vadd.f32 %v244_v26, %v52_v37 }
  0xab   :  { %768 = vrcp.f32 %v323_v52  ;;  %v1046_v63 = vmul.f32 0.70710677, %v1039_v57  ;;  %vm336_vm2 = vweird.f32 %v323_v52  ;;  %v340_v11 = vand.u32 2147483647, %v323_v52 }
  0xac   :  { %770 = vrcp.f32 %v324_v54  ;;  %v1042_v59 = vand.u32 2147483647, %v1035_v55  ;;  %v342_v15 = vand.u32 2147483648, %v323_v52  ;;  %v539_v16 = vmul.f32 1.442695, %v531_v61 }
  0xad   :  { %v1063_v13 = vand.u32 2147483647, %v1046_v63  ;;  %vm351_vm3 = vweird.f32 %v324_v54  ;;  %v355_v18 = vand.u32 2147483647, %v324_v54  ;;  %v357_v19 = vand.u32 2147483648, %v324_v54 }
  0xae   :  { %v317_v62 = vmul.f32 0.3275911, %v1042_v59  ;;  %v1068_v22 = vmul.f32 0.70710677, %v1060_v10  ;;  %vm1070_vm5 = vcmp.eq.f32.partialorder %v340_v11, 8.507059e+37  ;;  %v343_v28 = vor.u32 1.1754944e-38, %v342_v15 }
  0xaf   :  { %v318_v21 = vmul.f32 0.3275911, %v1063_v13  ;;  %v541_v25 = vmul.f32 1.442695, %v532_v8  ;;  %vm1077_vm8 = vcmp.eq.f32.partialorder %v355_v18, 8.507059e+37  ;;  %v358_v32 = vor.u32 1.1754944e-38, %v357_v19  ;;  %v258_v34 = vpop.f32.mrf.mxu2 }
  0xb0   :  { %v1058_v9 = vadd.f32 1.0, %v317_v62  ;;  %v525_v33 = vsub.f32 0.0, %v1042_v59  ;;  %v1086_v39 = vand.u32 2147483647, %v1068_v22  ;;  %v272_v41 = vpop.f32.mrf.mxu3  ;;  %v1105_v37 = vadd.f32 %v258_v34, %v53_v44 }
  0xb1   :  { %v769_v0 = vpop.eup %768  ;;  %v1074_v29 = vadd.f32 1.0, %v318_v21  ;;  %v1118_v62 = vmul.f32 0.70710677, %v1090_v40 }
  0xb2   :  { %v771_v6 = vpop.eup %770  ;;  %v332_v7 = vmul.f32 %v769_v0, %v323_v52  ;;  %772 = vrcp.f32 %v1058_v9  ;;  %vm337_vm4 = vweird.f32 %v769_v0  ;;  %v370_v48 = vand.u32 2147483647, %v1058_v9 }
  0xb3   :  { %v347_v12 = vmul.f32 %v771_v6, %v324_v54  ;;  %vm352_vm6 = vweird.f32 %v771_v6  ;;  %774 = vpow2.f32 %v539_v16  ;;  %vm338_vm7 = vmor %vm336_vm2, %vm337_vm4  ;;  %v372_v53 = vand.u32 2147483648, %v1058_v9 }
  0xb4   :  { %v333_v14 = vsub.f32 1.0, %v332_v7  ;;  %vm353_vm9 = vmor %vm351_vm3, %vm352_vm6  ;;  %776 = vrcp.f32 %v1074_v29  ;;  %v1111_v54 = vadd.f32 %v272_v41, %v54_v51  ;;  %v533_v60 = vmul.f32 %v525_v33, %v1042_v59 }
  0xb5   :  { %v348_v17 = vsub.f32 1.0, %v347_v12  ;;  %778 = vpow2.f32 %v541_v25  ;;  %v319_v61 = vmul.f32 0.3275911, %v1086_v39  ;;  %vm366_vm11 = vweird.f32 %v1058_v9 }
  0xb6   :  { %v334_v20 = vmul.f32 %v769_v0, %v333_v14  ;;  %vm1123_vm12 = vcmp.eq.f32.partialorder %v370_v48, 8.507059e+37  ;;  %v373_v14 = vor.u32 1.1754944e-38, %v372_v53  ;;  %v543_v25 = vmul.f32 1.442695, %v533_v60 }
  0xb7   :  { %v349_v24 = vmul.f32 %v771_v6, %v348_v17  ;;  %v1127_v59 = vadd.f32 1.0, %v319_v61  ;;  %v385_v17 = vand.u32 2147483647, %v1074_v29  ;;  %v387_v26 = vand.u32 2147483648, %v1074_v29 }
  0xb8   :  { %v335_v27 = vadd.f32 %v769_v0, %v334_v20  ;;  %v773_v36 = vpop.eup %772  ;;  %vm381_vm15 = vweird.f32 %v1074_v29  ;;  %vm293_vm4 = vcmp.lt.f32.partialorder %v1035_v55, 0.0 }
  0xb9   :  { %v350_v30 = vadd.f32 %v771_v6, %v349_v24  ;;  %v362_v45 = vmul.f32 %v773_v36, %v1058_v9  ;;  %v1113_v56 = vpop.eup %774  ;;  %vm367_vm10 = vweird.f32 %v773_v36  ;;  %780 = vrcp.f32 %v1127_v59 }
  0xba   :  { %v339_v38 = vsel %vm338_vm7, %v769_v0, %v335_v27  ;;  %v777_v7 = vpop.eup %776  ;;  %vm368_vm13 = vmor %vm366_vm11, %vm367_vm10  ;;  %v1134_v9 = vand.u32 2147483647, %v1118_v62  ;;  %vm1146_vm0 = vcmp.eq.f32.partialorder %v385_v17, 8.507059e+37  ;;  %v400_v61 = vand.u32 2147483647, %v1127_v59 }
  0xbb   :  { %v1094_v42 = vsel %vm1070_vm5, %v343_v28, %v339_v38  ;;  %v354_v43 = vsel %vm353_vm9, %v771_v6, %v350_v30  ;;  %v363_v52 = vsub.f32 1.0, %v362_v45  ;;  %v526_v6 = vsub.f32 0.0, %v1063_v13  ;;  %v779_v8 = vpop.eup %778 }
  0xbc   :  { %v451_v46 = vmul.f32 1.0614054, %v1094_v42  ;;  %v1100_v47 = vsel %vm1077_vm8, %v358_v32, %v354_v43  ;;  %v377_v15 = vmul.f32 %v777_v7, %v1074_v29  ;;  %vm382_vm14 = vweird.f32 %v777_v7 }
  0xbd   :  { %v452_v49 = vmul.f32 1.0614054, %v1100_v47  ;;  %v364_v0 = vmul.f32 %v773_v36, %v363_v52  ;;  %v534_v21 = vmul.f32 %v526_v6, %v1063_v13  ;;  %v320_v32 = vmul.f32 0.3275911, %v1134_v9  ;;  %vm383_vm1 = vmor %vm381_vm15, %vm382_vm14 }
  0xbe   :  { %v459_v58 = vadd.f32 -1.4531521, %v451_v46  ;;  %v378_v20 = vsub.f32 1.0, %v377_v15  ;;  %v388_v45 = vor.u32 1.1754944e-38, %v387_v26  ;;  %v527_v46 = vsub.f32 0.0, %v1086_v39 }
  0xbf   :  { %v460_v44 = vadd.f32 -1.4531521, %v452_v49  ;;  %v365_v12 = vadd.f32 %v773_v36, %v364_v0  ;;  %v545_v38 = vmul.f32 1.442695, %v534_v21  ;;  %v781_v41 = vpop.eup %780  ;;  %v1153_v48 = vadd.f32 1.0, %v320_v32 }
  0xc0   :  { %v467_v35 = vmul.f32 %v459_v58, %v1094_v42  ;;  %v379_v30 = vmul.f32 %v777_v7, %v378_v20  ;;  %v392_v53 = vmul.f32 %v781_v41, %v1127_v59  ;;  %vm396_vm2 = vweird.f32 %v1127_v59 }
  0xc1   :  { %v468_v11 = vmul.f32 %v460_v44, %v1100_v47  ;;  %v369_v19 = vsel %vm368_vm13, %v773_v36, %v365_v12  ;;  %782 = vrcp.f32 %v1153_v48  ;;  %vm397_vm3 = vweird.f32 %v781_v41 }
  0xc2   :  { %v475_v16 = vadd.f32 1.4214138, %v467_v35  ;;  %v1140_v24 = vsel %vm1123_vm12, %v373_v14, %v369_v19  ;;  %v380_v36 = vadd.f32 %v777_v7, %v379_v30  ;;  %784 = vpow2.f32 %v543_v25  ;;  %vm398_vm6 = vmor %vm396_vm2, %vm397_vm3 }
  0xc3   :  { %v476_v18 = vadd.f32 1.4214138, %v468_v11  ;;  %v453_v28 = vmul.f32 1.0614054, %v1140_v24  ;;  %v393_v51 = vsub.f32 1.0, %v392_v53  ;;  %786 = vpow2.f32 %v545_v38 }
  0xc4   :  { %v483_v23 = vmul.f32 %v475_v16, %v1094_v42  ;;  %v384_v52 = vsel %vm383_vm1, %v777_v7, %v380_v36  ;;  %v402_v7 = vand.u32 2147483648, %v1127_v59  ;;  %v1168_v11 = vmul.f32 0.70710677, %v1105_v37 }
  0xc5   :  { %v484_v27 = vmul.f32 %v476_v18, %v1100_v47  ;;  %v461_v34 = vadd.f32 -1.4531521, %v453_v28  ;;  %v1160_v60 = vsel %vm1146_vm0, %v388_v45, %v384_v52  ;;  %v394_v17 = vmul.f32 %v781_v41, %v393_v51 }
  0xc6   :  { %v491_v31 = vadd.f32 -0.28449672, %v483_v23  ;;  %v454_v6 = vmul.f32 1.0614054, %v1160_v60  ;;  %vm1176_vm5 = vcmp.eq.f32.partialorder %v400_v61, 8.507059e+37  ;;  %v403_v25 = vor.u32 1.1754944e-38, %v402_v7 }
  0xc7   :  { %v492_v33 = vadd.f32 -0.28449672, %v484_v27  ;;  %v469_v49 = vmul.f32 %v461_v34, %v1140_v24  ;;  %v395_v23 = vadd.f32 %v781_v41, %v394_v17  ;;  %v415_v32 = vand.u32 2147483647, %v1153_v48 }
  0xc8   :  { %v499_v43 = vmul.f32 %v491_v31, %v1094_v42  ;;  %v462_v15 = vadd.f32 -1.4531521, %v454_v6  ;;  %v535_v51 = vmul.f32 %v527_v46, %v1086_v39  ;;  %vm411_vm8 = vweird.f32 %v1153_v48 }
  0xc9   :  { %v500_v29 = vmul.f32 %v492_v33, %v1100_v47  ;;  %v477_v0 = vadd.f32 1.4214138, %v469_v49  ;;  %v399_v13 = vsel %vm398_vm6, %v781_v41, %v395_v23  ;;  %v417_v33 = vand.u32 2147483648, %v1153_v48 }
  0xca   :  { %v507_v58 = vadd.f32 0.2548296, %v499_v43  ;;  %v470_v19 = vmul.f32 %v462_v15, %v1160_v60  ;;  %v1195_v45 = vsel %vm1176_vm5, %v403_v25, %v399_v13  ;;  %v528_v46 = vsub.f32 0.0, %v1134_v9 }
  0xcb   :  { %v508_v44 = vadd.f32 0.2548296, %v500_v29  ;;  %v485_v14 = vmul.f32 %v477_v0, %v1140_v24  ;;  %v455_v29 = vmul.f32 1.0614054, %v1195_v45  ;;  %v418_v39 = vor.u32 1.1754944e-38, %v417_v33 }
  0xcc   :  { %v515_v35 = vmul.f32 %v507_v58, %v1094_v42  ;;  %v478_v28 = vadd.f32 1.4214138, %v470_v19  ;;  %vm416_vm10 = vcmp.eq.f32.partialorder %v415_v32, 8.507059e+37  ;;  %v547_v17 = vmul.f32 1.442695, %v535_v51 }
  0xcd   :  { %v516_v12 = vmul.f32 %v508_v44, %v1100_v47  ;;  %v493_v42 = vadd.f32 -0.28449672, %v485_v14  ;;  %v783_v47 = vpop.eup %782  ;;  %v463_v58 = vadd.f32 -1.4531521, %v455_v29  ;;  %vm294_vm11 = vcmp.lt.f32.partialorder %v1046_v63, 0.0 }
  0xce   :  { %v555_v16 = vmul.f32 %v1113_v56, %v515_v35  ;;  %v1181_v56 = vand.u32 2147483647, %v1168_v11  ;;  %v785_v26 = vpop.eup %784  ;;  %v407_v30 = vmul.f32 %v783_v47, %v1153_v48  ;;  %v486_v43 = vmul.f32 %v478_v28, %v1160_v60 }
  0xcf   :  { %v556_v18 = vmul.f32 %v779_v8, %v516_v12  ;;  %v501_v8 = vmul.f32 %v493_v42, %v1140_v24  ;;  %v787_v34 = vpop.eup %786  ;;  %vm412_vm7 = vweird.f32 %v783_v47  ;;  %v301_v12 = vsel %vm293_vm4, -1.0, %v800_v2 }
  0xd0   :  { %v563_v21 = vsub.f32 1.0, %v555_v16  ;;  %v408_v49 = vsub.f32 1.0, %v407_v30  ;;  %v494_v53 = vadd.f32 -0.28449672, %v486_v43  ;;  %vm413_vm9 = vmor %vm411_vm8, %vm412_vm7  ;;  %v277_v42 = vmul.f32 0.5, %v1031_v50 }
  0xd1   :  { %v564_v27 = vsub.f32 1.0, %v556_v18  ;;  %v509_v38 = vadd.f32 0.2548296, %v501_v8  ;;  %v536_v55 = vmul.f32 %v528_v46, %v1134_v9  ;;  %v1228_v25 = vmul.f32 0.70710677, %v1111_v54 }
  0xd2   :  { %v571_v31 = vmul.f32 %v563_v21, %v1051_v3  ;;  %v321_v3 = vmul.f32 0.3275911, %v1181_v56  ;;  %v409_v61 = vmul.f32 %v783_v47, %v408_v49  ;;  %v502_v35 = vmul.f32 %v494_v53, %v1160_v60 }
  0xd3   :  { %v572_v36 = vmul.f32 %v564_v27, %v1056_v5  ;;  %v517_v52 = vmul.f32 %v509_v38, %v1140_v24  ;;  %v471_v24 = vmul.f32 %v463_v58, %v1195_v45  ;;  %v302_v63 = vsel %vm294_vm11, -1.0, %v800_v2 }
  0xd4   :  { %v579_v59 = vadd.f32 1.0, %v571_v31  ;;  %v1201_v44 = vadd.f32 1.0, %v321_v3  ;;  %v510_v7 = vadd.f32 0.2548296, %v502_v35  ;;  %v1235_v9 = vand.u32 2147483647, %v1228_v25 }
  0xd5   :  { %v580_v41 = vadd.f32 1.0, %v572_v36  ;;  %v557_v6 = vmul.f32 %v785_v26, %v517_v52  ;;  %v479_v14 = vadd.f32 1.4214138, %v471_v24  ;;  %v278_v26 = vmul.f32 0.5, %v1039_v57 }
  0xd6   :  { %v587_v5 = vmul.f32 %v579_v59, %v1048_v1  ;;  %v410_v1 = vadd.f32 %v783_v47, %v409_v61  ;;  %788 = vrcp.f32 %v1201_v44  ;;  %v518_v16 = vmul.f32 %v510_v7, %v1160_v60 }
  0xd7   :  { %v588_v0 = vmul.f32 %v580_v41, %v1053_v4  ;;  %v565_v4 = vsub.f32 1.0, %v557_v6  ;;  %v487_v19 = vmul.f32 %v479_v14, %v1195_v45  ;;  %790 = vpow2.f32 %v547_v17 }
  0xd8   :  { %595 = vst [vmem:[%s1281_s3] sm:$0xff] %v587_v5  ;;  %v414_v15 = vsel %vm413_vm9, %v783_v47, %v410_v1  ;;  %v558_v23 = vmul.f32 %v787_v34, %v518_v16  ;;  %v549_v13 = vmul.f32 1.442695, %v536_v55  ;;  %v432_v33 = vand.u32 2147483648, %v1201_v44 }
  0xd9   :  { %596 = vst [vmem:[%s1281_s3 + $0x8] sm:$0xff] %v588_v0  ;;  %v573_v48 = vmul.f32 %v565_v4, %v301_v12  ;;  %v419_v18 = vsel %vm416_vm10, %v418_v39, %v414_v15  ;;  %v495_v60 = vadd.f32 -0.28449672, %v487_v19  ;;  %v322_v38 = vmul.f32 0.3275911, %v1235_v9 }
  0xda   :  { %v456_v20 = vmul.f32 1.0614054, %v419_v18  ;;  %v566_v28 = vsub.f32 1.0, %v558_v23  ;;  %v430_v29 = vand.u32 2147483647, %v1201_v44  ;;  %vm295_vm13 = vcmp.lt.f32.partialorder %v1068_v22, 0.0 }
  0xdb   :  { %v581_v21 = vadd.f32 1.0, %v573_v48  ;;  %v503_v30 = vmul.f32 %v495_v60, %v1195_v45  ;;  %v330_v41 = vadd.f32 1.0, %v322_v38  ;;  %vm426_vm14 = vweird.f32 %v1201_v44 }
  0xdc   :  { %v789_v47 = vpop.eup %788  ;;  %v464_v27 = vadd.f32 -1.4531521, %v456_v20  ;;  %v574_v57 = vmul.f32 %v566_v28, %v302_v63  ;;  %v433_v0 = vor.u32 1.1754944e-38, %v432_v33  ;;  %vm431_vm0 = vcmp.eq.f32.partialorder %v430_v29, 8.507059e+37 }
  0xdd   :  { %v589_v8 = vmul.f32 %v581_v21, %v277_v42  ;;  %v422_v50 = vmul.f32 %v789_v47, %v1201_v44  ;;  %v511_v34 = vadd.f32 0.2548296, %v503_v30  ;;  %vm427_vm12 = vweird.f32 %v789_v47  ;;  %v791_v52 = vpop.eup %790 }
  0xde   :  { %v472_v31 = vmul.f32 %v464_v27, %v419_v18  ;;  %v582_v43 = vadd.f32 1.0, %v574_v57  ;;  %vm428_vm15 = vmor %vm426_vm14, %vm427_vm12  ;;  %792 = vrcp.f32 %v330_v41  ;;  %v529_v24 = vsub.f32 0.0, %v1181_v56 }
  0xdf   :  { %597 = vst [vmem:[%s1281_s3 + $0x10] sm:$0xff] %v589_v8  ;;  %v423_v32 = vsub.f32 1.0, %v422_v50  ;;  %v519_v49 = vmul.f32 %v511_v34, %v1195_v45  ;;  %794 = vpow2.f32 %v549_v13  ;;  %v303_v44 = vsel %vm295_vm13, -1.0, %v800_v2 }
  0xe0   :  { %v480_v36 = vadd.f32 1.4214138, %v472_v31  ;;  %v590_v53 = vmul.f32 %v582_v43, %v278_v26  ;;  %v279_v12 = vmul.f32 0.5, %v1060_v10  ;;  %v537_v48 = vmul.f32 %v529_v24, %v1181_v56 }
  0xe1   :  { %v424_v59 = vmul.f32 %v789_v47, %v423_v32  ;;  %v559_v58 = vmul.f32 %v791_v52, %v519_v49  ;;  %vm296_vm1 = vcmp.lt.f32.partialorder %v1118_v62, 0.0  ;;  %v445_v26 = vand.u32 2147483647, %v330_v41 }
  0xe2   :  { %v488_v3 = vmul.f32 %v480_v36, %v419_v18  ;;  %598 = vst [vmem:[%s1281_s3 + $0x18] sm:$0xff] %v590_v53  ;;  %v304_v23 = vsel %vm296_vm1, -1.0, %v800_v2  ;;  %v551_v55 = vmul.f32 1.442695, %v537_v48  ;;  %vm441_vm3 = vweird.f32 %v330_v41 }
  0xe3   :  { %v425_v5 = vadd.f32 %v789_v47, %v424_v59  ;;  %v567_v6 = vsub.f32 1.0, %v559_v58  ;;  %v280_v8 = vmul.f32 0.5, %v1090_v40  ;;  %vm446_vm5 = vcmp.eq.f32.partialorder %v445_v26, 8.507059e+37 }
  0xe4   :  { %v496_v61 = vadd.f32 -0.28449672, %v488_v3  ;;  %v793_v46 = vpop.eup %792  ;;  %796 = vpow2.f32 %v551_v55  ;;  %v530_v13 = vsub.f32 0.0, %v1235_v9  ;;  %vm297_vm6 = vcmp.lt.f32.partialorder %v1168_v11, 0.0 }
  0xe5   :  { %v429_v45 = vsel %vm428_vm15, %v789_v47, %v425_v5  ;;  %v575_v4 = vmul.f32 %v567_v6, %v303_v44  ;;  %v795_v16 = vpop.eup %794  ;;  %v437_v42 = vmul.f32 %v793_v46, %v330_v41  ;;  %vm442_vm2 = vweird.f32 %v793_v46 }
  0xe6   :  { %v504_v35 = vmul.f32 %v496_v61, %v419_v18  ;;  %v434_v51 = vsel %vm431_vm0, %v433_v0, %v429_v45  ;;  %vm443_vm4 = vmor %vm441_vm3, %vm442_vm2  ;;  %v538_v38 = vmul.f32 %v530_v13, %v1235_v9  ;;  %v305_v3 = vsel %vm297_vm6, -1.0, %v800_v2 }
  0xe7   :  { %v457_v1 = vmul.f32 1.0614054, %v434_v51  ;;  %v583_v14 = vadd.f32 1.0, %v575_v4  ;;  %v438_v21 = vsub.f32 1.0, %v437_v42  ;;  %v281_v5 = vmul.f32 0.5, %v1105_v37 }
  0xe8   :  { %v512_v7 = vadd.f32 0.2548296, %v504_v35  ;;  %vm298_vm7 = vcmp.lt.f32.partialorder %v1228_v25, 0.0  ;;  %v282_v37 = vmul.f32 0.5, %v1111_v54 }
  0xe9   :  { %v465_v39 = vadd.f32 -1.4531521, %v457_v1  ;;  %v591_v19 = vmul.f32 %v583_v14, %v279_v12  ;;  %v439_v56 = vmul.f32 %v793_v46, %v438_v21  ;;  %v306_v24 = vsel %vm298_vm7, -1.0, %v800_v2 }
  0xea   :  { %v520_v15 = vmul.f32 %v512_v7, %v419_v18  ;;  %v447_v18 = vand.u32 2147483648, %v330_v41  ;;  %v797_v40 = vpop.eup %796  ;;  %v553_v41 = vmul.f32 1.442695, %v538_v38 }
  0xeb   :  { %v473_v17 = vmul.f32 %v465_v39, %v434_v51  ;;  %599 = vst [vmem:[%s1281_s3 + $0x20] sm:$0xff] %v591_v19  ;;  %v440_v27 = vadd.f32 %v793_v46, %v439_v56 }
  0xec   :  { %v560_v20 = vmul.f32 %v795_v16, %v520_v15  ;;  %v448_v50 = vor.u32 1.1754944e-38, %v447_v18  ;;  %798 = vpow2.f32 %v553_v41 }
  0xed   :  { %v481_v22 = vadd.f32 1.4214138, %v473_v17  ;;  %v444_v30 = vsel %vm443_vm4, %v793_v46, %v440_v27 }
  0xee   :  { %v568_v10 = vsub.f32 1.0, %v560_v20  ;;  %v449_v57 = vsel %vm446_vm5, %v448_v50, %v444_v30 }
  0xef   :  { %v489_v47 = vmul.f32 %v481_v22, %v434_v51  ;;  %v458_v33 = vmul.f32 1.0614054, %v449_v57 }
  0xf0   :  { %v576_v62 = vmul.f32 %v568_v10, %v304_v23 }
  0xf1   :  { %v497_v60 = vadd.f32 -0.28449672, %v489_v47  ;;  %v466_v36 = vadd.f32 -1.4531521, %v458_v33 }
  0xf2   :  { %v584_v28 = vadd.f32 1.0, %v576_v62  ;;  %v799_v6 = vpop.eup %798 }
  0xf3   :  { %v505_v63 = vmul.f32 %v497_v60, %v434_v51  ;;  %v474_v59 = vmul.f32 %v466_v36, %v449_v57 }
  0xf4   :  { %v592_v31 = vmul.f32 %v584_v28, %v280_v8 }
  0xf5   :  { %v513_v32 = vadd.f32 0.2548296, %v505_v63  ;;  %v482_v49 = vadd.f32 1.4214138, %v474_v59 }
  0xf6   :  { %600 = vst [vmem:[%s1281_s3 + $0x28] sm:$0xff] %v592_v31 }
  0xf7   :  { %v521_v34 = vmul.f32 %v513_v32, %v434_v51  ;;  %v490_v53 = vmul.f32 %v482_v49, %v449_v57 }
  0xf9   :  { %v561_v43 = vmul.f32 %v797_v40, %v521_v34  ;;  %v498_v61 = vadd.f32 -0.28449672, %v490_v53 }
  0xfb   :  { %v569_v29 = vsub.f32 1.0, %v561_v43  ;;  %v506_v45 = vmul.f32 %v498_v61, %v449_v57 }
  0xfd   :  { %v577_v52 = vmul.f32 %v569_v29, %v305_v3  ;;  %v514_v11 = vadd.f32 0.2548296, %v506_v45 }
  0xff   :  { %v585_v58 = vadd.f32 1.0, %v577_v52  ;;  %v522_v9 = vmul.f32 %v514_v11, %v449_v57 }
 0x101   :  { %v593_v0 = vmul.f32 %v585_v58, %v281_v5  ;;  %v562_v35 = vmul.f32 %v799_v6, %v522_v9 }
 0x103   :  { %601 = vst [vmem:[%s1281_s3 + $0x30] sm:$0xff] %v593_v0  ;;  %v570_v51 = vsub.f32 1.0, %v562_v35 }
 0x105   :  { %v578_v44 = vmul.f32 %v570_v51, %v306_v24 }
 0x107   :  { %v586_v1 = vadd.f32 1.0, %v578_v44 }
 0x109   :  { %v594_v4 = vmul.f32 %v586_v1, %v282_v37 }
 0x10b   :  { %602 = vst [vmem:[%s1281_s3 + $0x38] sm:$0xff] %v594_v4 }

// kernel: bert_encoder.20
= control target key start
LH: loop header
LB: loop body
LE: loop exit
PB: predicated region body
PF: predicated region fallthrough
CT: control target
= control target key end

     0   :  { %s760_s1 = inlined_call_operand.vmem [shape: bf16[512,128], index: 1, kind: input, shape index: {}]   ;;  %s761_s2 = inlined_call_operand.vmem [shape: f32[1,128], index: 2, kind: input, shape index: {}]   ;;  %s762_s0 = inlined_call_operand.vmem [shape: f32[16,512], index: 0, kind: input, shape index: {}]   ;;  %s763_s4 = inlined_call_operand.vmem [shape: f32[1,128], index: 4, kind: input, shape index: {}]   ;;  %s764_s5 = inlined_call_operand.vmem [shape: f32[1,128], index: 5, kind: input, shape index: {}]   ;;  %s765_s3 = inlined_call_operand.vmem [shape: f32[16,128], index: 3, kind: input, shape index: {}]   ;;  %s766_s6 = inlined_call_operand.vmem [shape: f32[16,128], index: 6, kind: output, shape index: {}]  }
   0x1   :  { %v552_v0 = vld [vmem:[%s760_s1 + $0x38] sm:$0xff]  ;;  %v551_v4 = vld [vmem:[%s760_s1 + $0x30] sm:$0xff]  ;;  %v550_v8 = vld [vmem:[%s760_s1 + $0x28] sm:$0xff] }
   0x2   :  { %v560_v1 = vld [vmem:[%s760_s1 + $0x78] sm:$0xff]  ;;  %295 = vmatpush.bf16.msra.mxu0 %v552_v0  ;;  %v559_v5 = vld [vmem:[%s760_s1 + $0x70] sm:$0xff]  ;;  %v558_v9 = vld [vmem:[%s760_s1 + $0x68] sm:$0xff] }
   0x3   :  { %v568_v2 = vld [vmem:[%s760_s1 + $0xb8] sm:$0xff]  ;;  %309 = vmatpush.bf16.msra.mxu1 %v560_v1  ;;  %v567_v6 = vld [vmem:[%s760_s1 + $0xb0] sm:$0xff]  ;;  %v566_v10 = vld [vmem:[%s760_s1 + $0xa8] sm:$0xff] }
   0x4   :  { %v576_v3 = vld [vmem:[%s760_s1 + $0xf8] sm:$0xff]  ;;  %323 = vmatpush.bf16.msra.mxu2 %v568_v2  ;;  %v575_v7 = vld [vmem:[%s760_s1 + $0xf0] sm:$0xff]  ;;  %v574_v11 = vld [vmem:[%s760_s1 + $0xe8] sm:$0xff] }
   0x5   :  { %337 = vmatpush.bf16.msra.mxu3 %v576_v3  ;;  %v549_v12 = vld [vmem:[%s760_s1 + $0x20] sm:$0xff]  ;;  %v548_v16 = vld [vmem:[%s760_s1 + $0x18] sm:$0xff]  ;;  %v547_v20 = vld [vmem:[%s760_s1 + $0x10] sm:$0xff] }
   0x6   :  { %296 = vmatpush.bf16.msra.mxu0 %v551_v4  ;;  %v557_v13 = vld [vmem:[%s760_s1 + $0x60] sm:$0xff]  ;;  %v556_v17 = vld [vmem:[%s760_s1 + $0x58] sm:$0xff]  ;;  %v555_v21 = vld [vmem:[%s760_s1 + $0x50] sm:$0xff] }
   0x7   :  { %310 = vmatpush.bf16.msra.mxu1 %v559_v5  ;;  %v565_v14 = vld [vmem:[%s760_s1 + $0xa0] sm:$0xff]  ;;  %v564_v18 = vld [vmem:[%s760_s1 + $0x98] sm:$0xff]  ;;  %v563_v22 = vld [vmem:[%s760_s1 + $0x90] sm:$0xff] }
   0x8   :  { %324 = vmatpush.bf16.msra.mxu2 %v567_v6  ;;  %v573_v15 = vld [vmem:[%s760_s1 + $0xe0] sm:$0xff]  ;;  %v572_v19 = vld [vmem:[%s760_s1 + $0xd8] sm:$0xff]  ;;  %v571_v23 = vld [vmem:[%s760_s1 + $0xd0] sm:$0xff] }
   0x9   :  { %338 = vmatpush.bf16.msra.mxu3 %v575_v7  ;;  %v546_v24 = vld [vmem:[%s760_s1 + $0x8] sm:$0xff]  ;;  %v545_v28 = vld [vmem:[%s760_s1] sm:$0xff]  ;;  %v25_v36 = vld [vmem:[%s762_s0 + $0x10] sm:$0xff] }
   0xa   :  { %297 = vmatpush.bf16.msra.mxu0 %v550_v8  ;;  %v554_v25 = vld [vmem:[%s760_s1 + $0x48] sm:$0xff]  ;;  %v553_v29 = vld [vmem:[%s760_s1 + $0x40] sm:$0xff]  ;;  %v29_v37 = vld [vmem:[%s762_s0 + $0x30] sm:$0xff] }
   0xb   :  { %311 = vmatpush.bf16.msra.mxu1 %v558_v9  ;;  %v562_v26 = vld [vmem:[%s760_s1 + $0x88] sm:$0xff]  ;;  %v561_v30 = vld [vmem:[%s760_s1 + $0x80] sm:$0xff]  ;;  %v26_v38 = vld [vmem:[%s762_s0 + $0x18] sm:$0xff]  ;;  %v33_v42 = vpack.c.bf16 %v29_v37, %v25_v36 }
   0xc   :  { %325 = vmatpush.bf16.msra.mxu2 %v566_v10  ;;  %v570_v27 = vld [vmem:[%s760_s1 + $0xc8] sm:$0xff]  ;;  %v569_v31 = vld [vmem:[%s760_s1 + $0xc0] sm:$0xff]  ;;  %v30_v39 = vld [vmem:[%s762_s0 + $0x38] sm:$0xff] }
   0xd   :  { %339 = vmatpush.bf16.msra.mxu3 %v574_v11  ;;  %v23_v32 = vld [vmem:[%s762_s0] sm:$0xff]  ;;  %v24_v34 = vld [vmem:[%s762_s0 + $0x8] sm:$0xff]  ;;  %v34_v43 = vpack.c.bf16 %v30_v39, %v26_v38 }
   0xe   :  { %298 = vmatpush.bf16.msra.mxu0 %v549_v12  ;;  %v27_v33 = vld [vmem:[%s762_s0 + $0x20] sm:$0xff]  ;;  %v28_v35 = vld [vmem:[%s762_s0 + $0x28] sm:$0xff] }
   0xf   :  { %312 = vmatpush.bf16.msra.mxu1 %v557_v13  ;;  %v31_v40 = vpack.c.bf16 %v27_v33, %v23_v32  ;;  %v32_v41 = vpack.c.bf16 %v28_v35, %v24_v34  ;;  %v577_v44 = vld [vmem:[%s761_s2] ss:$0 sm:$0xff]  ;;  %v352_v63 = vld [vmem:[%s765_s3 + $0x8] sm:$0xff] }
  0x10   :  { %326 = vmatpush.bf16.msra.mxu2 %v565_v14  ;;  %v351_v53 = vld [vmem:[%s765_s3] sm:$0xff] }
  0x11   :  { %340 = vmatpush.bf16.msra.mxu3 %v573_v15 }
  0x12   :  { %299 = vmatpush.bf16.msra.mxu0 %v548_v16 }
  0x13   :  { %313 = vmatpush.bf16.msra.mxu1 %v556_v17 }
  0x14   :  { %327 = vmatpush.bf16.msra.mxu2 %v564_v18 }
  0x15   :  { %341 = vmatpush.bf16.msra.mxu3 %v572_v19 }
  0x16   :  { %300 = vmatpush.bf16.msra.mxu0 %v547_v20 }
  0x17   :  { %314 = vmatpush.bf16.msra.mxu1 %v555_v21 }
  0x18   :  { %328 = vmatpush.bf16.msra.mxu2 %v563_v22 }
  0x19   :  { %342 = vmatpush.bf16.msra.mxu3 %v571_v23 }
  0x1a   :  { %301 = vmatpush.bf16.msra.mxu0 %v546_v24 }
  0x1b   :  { %315 = vmatpush.bf16.msra.mxu1 %v554_v25 }
  0x1c   :  { %329 = vmatpush.bf16.msra.mxu2 %v562_v26  ;;  %v578_v26 = vld [vmem:[%s763_s4] ss:$0 sm:$0xff] }
  0x1d   :  { %343 = vmatpush.bf16.msra.mxu3 %v570_v27 }
  0x1e   :  { %302 = vmatpush.bf16.msra.mxu0 %v545_v28 }
  0x1f   :  { %316 = vmatpush.bf16.msra.mxu1 %v553_v29  ;;  %v579_v29 = vld [vmem:[%s764_s5] ss:$0 sm:$0xff] }
  0x20   :  { %330 = vmatpush.bf16.msra.mxu2 %v561_v30 }
  0x21   :  { %344 = vmatpush.bf16.msra.mxu3 %v569_v31  ;;  %303 = vmatmul.bf16.vlgmr.msra.gmra.mxu0 %v31_v40 }
  0x22   :  { %317 = vmatmul.bf16.vlgmr.msra.gmra.mxu1 %v32_v41 }
  0x23   :  { %331 = vmatmul.bf16.vlgmr.msra.gmra.mxu2 %v33_v42 }
  0x24   :  { %345 = vmatmul.bf16.vlgmr.msra.gmra.mxu3 %v34_v43 }
  0x9e   :  { %v304_v45 = vpop.f32.mrf.mxu0 }
  0x9f   :  { %v305_v46 = vadd.f32 %v577_v44, %v304_v45  ;;  %v318_v47 = vpop.f32.mrf.mxu1 }
  0xa1   :  { %v319_v48 = vadd.f32 %v318_v47, %v305_v46 }
  0xa6   :  { %v332_v49 = vpop.f32.mrf.mxu2  ;;  %v306_v52 = vpop.f32.mrf.mxu0 }
  0xa7   :  { %v346_v50 = vpop.f32.mrf.mxu3  ;;  %v333_v51 = vadd.f32 %v332_v49, %v319_v48  ;;  %v307_v55 = vadd.f32 %v577_v44, %v306_v52  ;;  %v320_v57 = vpop.f32.mrf.mxu1 }
  0xa9   :  { %v347_v54 = vadd.f32 %v346_v50, %v333_v51  ;;  %v321_v58 = vadd.f32 %v320_v57, %v307_v55 }
  0xab   :  { %v353_v56 = vadd.f32 %v351_v53, %v347_v54 }
  0xad   :  { %355 = vadd.xlane.f32.xlu0 %v353_v56  ;;  %v361_v59 = vmul.f32 %v353_v56, %v353_v56 }
  0xae   :  { %v334_v60 = vpop.f32.mrf.mxu2 }
  0xaf   :  { %v335_v61 = vadd.f32 %v334_v60, %v321_v58  ;;  %363 = vadd.xlane.f32.xlu1 %v361_v59  ;;  %v348_v62 = vpop.f32.mrf.mxu3 }
  0xb1   :  { %v349_v0 = vadd.f32 %v348_v62, %v335_v61 }
  0xb3   :  { %v354_v1 = vadd.f32 %v352_v63, %v349_v0 }
  0xb5   :  { %357 = vadd.xlane.f32.xlu0 %v354_v1  ;;  %v362_v2 = vmul.f32 %v354_v1, %v354_v1 }
  0xb7   :  { %365 = vadd.xlane.f32.xlu1 %v362_v2 }
 0x120   :  { %v356_v3 = vpop.xlane.xlu0 %355 }
 0x121   :  { %v359_v4 = vmul.f32 0.0078125, %v356_v3 }
 0x122   :  { %v364_v5 = vpop.xlane.xlu1 %363 }
 0x123   :  { %v369_v6 = vmul.f32 %v359_v4, %v359_v4  ;;  %v367_v7 = vmul.f32 0.0078125, %v364_v5  ;;  %v373_v25 = vsub.f32 %v353_v56, %v359_v4 }
 0x125   :  { %v371_v8 = vsub.f32 %v367_v7, %v369_v6 }
 0x127   :  { %v375_v9 = vadd.f32 1e-12, %v371_v8 }
 0x128   :  { %v358_v10 = vpop.xlane.xlu0 %357 }
 0x129   :  { %580 = vrsqrt.f32 %v375_v9  ;;  %v360_v11 = vmul.f32 0.0078125, %v358_v10  ;;  %vm383_vm1 = vweird.f32 %v375_v9 }
 0x12a   :  { %v366_v12 = vpop.xlane.xlu1 %365 }
 0x12b   :  { %v370_v13 = vmul.f32 %v360_v11, %v360_v11  ;;  %v368_v14 = vmul.f32 0.0078125, %v366_v12  ;;  %v374_v36 = vsub.f32 %v354_v1, %v360_v11 }
 0x12d   :  { %v372_v15 = vsub.f32 %v368_v14, %v370_v13 }
 0x12f   :  { %v581_v16 = vpop.eup %580  ;;  %v376_v17 = vadd.f32 1e-12, %v372_v15 }
 0x130   :  { %v378_v18 = vmul.f32 %v581_v16, %v375_v9  ;;  %vm384_vm0 = vweird.f32 %v581_v16 }
 0x131   :  { %582 = vrsqrt.f32 %v376_v17  ;;  %vm385_vm2 = vmor %vm383_vm1, %vm384_vm0  ;;  %vm393_vm4 = vweird.f32 %v376_v17 }
 0x132   :  { %v379_v19 = vmul.f32 %v581_v16, %v378_v18 }
 0x134   :  { %v380_v20 = vmul.f32 0.5, %v379_v19 }
 0x136   :  { %v381_v21 = vsub.f32 1.5, %v380_v20 }
 0x137   :  { %v583_v22 = vpop.eup %582 }
 0x138   :  { %v382_v23 = vmul.f32 %v581_v16, %v381_v21  ;;  %v388_v24 = vmul.f32 %v583_v22, %v376_v17  ;;  %vm394_vm3 = vweird.f32 %v583_v22 }
 0x139   :  { %vm395_vm5 = vmor %vm393_vm4, %vm394_vm3 }
 0x13a   :  { %v386_v27 = vsel %vm385_vm2, %v581_v16, %v382_v23  ;;  %v389_v28 = vmul.f32 %v583_v22, %v388_v24 }
 0x13b   :  { %v397_v30 = vmul.f32 %v386_v27, %v373_v25 }
 0x13c   :  { %v390_v31 = vmul.f32 0.5, %v389_v28 }
 0x13d   :  { %v403_v32 = vmul.f32 %v578_v26, %v397_v30 }
 0x13e   :  { %v391_v33 = vsub.f32 1.5, %v390_v31 }
 0x13f   :  { %v409_v34 = vadd.f32 %v579_v29, %v403_v32 }
 0x140   :  { %v392_v35 = vmul.f32 %v583_v22, %v391_v33 }
 0x141   :  { %411 = vst [vmem:[%s766_s6] sm:$0xff] %v409_v34 }
 0x142   :  { %v396_v37 = vsel %vm395_vm5, %v583_v22, %v392_v35 }
 0x143   :  { %v398_v38 = vmul.f32 %v396_v37, %v374_v36 }
 0x145   :  { %v404_v39 = vmul.f32 %v578_v26, %v398_v38 }
 0x147   :  { %v410_v40 = vadd.f32 %v579_v29, %v404_v39 }
 0x149   :  { %412 = vst [vmem:[%s766_s6 + $0x8] sm:$0xff] %v410_v40 }

// kernel: bert_encoder.27
= control target key start
LH: loop header
LB: loop body
LE: loop exit
PB: predicated region body
PF: predicated region fallthrough
CT: control target
= control target key end

     0   :  { %s804_s0 = inlined_call_operand.vmem [shape: f32[16,512], index: 0, kind: input, shape index: {}]   ;;  %s805_s1 = inlined_call_operand.vmem [shape: bf16[512,128], index: 1, kind: input, shape index: {}]   ;;  %s806_s2 = inlined_call_operand.vmem [shape: f32[1,128], index: 2, kind: input, shape index: {}]   ;;  %s807_s3 = inlined_call_operand.vmem [shape: f32[16,128], index: 3, kind: input, shape index: {}]   ;;  %s808_s4 = inlined_call_operand.vmem [shape: f32[1,128], index: 4, kind: input, shape index: {}]   ;;  %s809_s5 = inlined_call_operand.vmem [shape: f32[1,128], index: 5, kind: input, shape index: {}]   ;;  %s810_s6 = inlined_call_operand.hbm [shape: f32[16,128], index: 6, kind: output, shape index: {}]  }
   0x1   :  { %v567_v0 = vld [vmem:[%s805_s1 + $0x38] sm:$0xff]  ;;  %v566_v4 = vld [vmem:[%s805_s1 + $0x30] sm:$0xff]  ;;  %v565_v8 = vld [vmem:[%s805_s1 + $0x28] sm:$0xff] }
   0x2   :  { %v575_v1 = vld [vmem:[%s805_s1 + $0x78] sm:$0xff]  ;;  %296 = vmatpush.bf16.msra.mxu0 %v567_v0  ;;  %v574_v5 = vld [vmem:[%s805_s1 + $0x70] sm:$0xff]  ;;  %v573_v9 = vld [vmem:[%s805_s1 + $0x68] sm:$0xff] }
   0x3   :  { %v583_v2 = vld [vmem:[%s805_s1 + $0xb8] sm:$0xff]  ;;  %310 = vmatpush.bf16.msra.mxu1 %v575_v1  ;;  %v582_v6 = vld [vmem:[%s805_s1 + $0xb0] sm:$0xff]  ;;  %v581_v10 = vld [vmem:[%s805_s1 + $0xa8] sm:$0xff] }
   0x4   :  { %v591_v3 = vld [vmem:[%s805_s1 + $0xf8] sm:$0xff]  ;;  %324 = vmatpush.bf16.msra.mxu2 %v583_v2  ;;  %v590_v7 = vld [vmem:[%s805_s1 + $0xf0] sm:$0xff]  ;;  %v589_v11 = vld [vmem:[%s805_s1 + $0xe8] sm:$0xff] }
   0x5   :  { %338 = vmatpush.bf16.msra.mxu3 %v591_v3  ;;  %v564_v12 = vld [vmem:[%s805_s1 + $0x20] sm:$0xff]  ;;  %v563_v16 = vld [vmem:[%s805_s1 + $0x18] sm:$0xff] }
   0x6   :  { %297 = vmatpush.bf16.msra.mxu0 %v566_v4  ;;  %v572_v13 = vld [vmem:[%s805_s1 + $0x60] sm:$0xff]  ;;  %v571_v17 = vld [vmem:[%s805_s1 + $0x58] sm:$0xff] }
   0x7   :  { %311 = vmatpush.bf16.msra.mxu1 %v574_v5  ;;  %v580_v14 = vld [vmem:[%s805_s1 + $0xa0] sm:$0xff] }
   0x8   :  { %325 = vmatpush.bf16.msra.mxu2 %v582_v6  ;;  %v588_v15 = vld [vmem:[%s805_s1 + $0xe0] sm:$0xff] }
   0x9   :  { %339 = vmatpush.bf16.msra.mxu3 %v590_v7 }
   0xa   :  { %298 = vmatpush.bf16.msra.mxu0 %v565_v8 }
   0xb   :  { %312 = vmatpush.bf16.msra.mxu1 %v573_v9 }
   0xc   :  { %326 = vmatpush.bf16.msra.mxu2 %v581_v10 }
   0xd   :  { %340 = vmatpush.bf16.msra.mxu3 %v589_v11 }
   0xe   :  { %299 = vmatpush.bf16.msra.mxu0 %v564_v12 }
   0xf   :  { %313 = vmatpush.bf16.msra.mxu1 %v572_v13 }
  0x10   :  { %11 = vsyncpa [#allocation3], 0  ;;  %327 = vmatpush.bf16.msra.mxu2 %v580_v14  ;;  %v579_v18 = vld [vmem:[%s805_s1 + $0x98] sm:$0xff]  ;;  %v562_v20 = vld [vmem:[%s805_s1 + $0x10] sm:$0xff]  ;;  %s420_s14 = sshll.u32 %s810_s6, 4  ;;  %s630_s15 = smov 8   ;;  %s421_s14 = int_to_ptr.hbm [resolvable:$true] %s420_s14 }
  0x11   :  { %341 = vmatpush.bf16.msra.mxu3 %v588_v15  ;;  %v587_v19 = vld [vmem:[%s805_s1 + $0xd8] sm:$0xff]  ;;  %v570_v21 = vld [vmem:[%s805_s1 + $0x50] sm:$0xff]  ;;  %v561_v24 = vld [vmem:[%s805_s1 + $0x8] sm:$0xff] }
  0x12   :  { %300 = vmatpush.bf16.msra.mxu0 %v563_v16  ;;  %v578_v22 = vld [vmem:[%s805_s1 + $0x90] sm:$0xff]  ;;  %v569_v25 = vld [vmem:[%s805_s1 + $0x48] sm:$0xff]  ;;  %v560_v28 = vld [vmem:[%s805_s1] sm:$0xff] }
  0x13   :  { %314 = vmatpush.bf16.msra.mxu1 %v571_v17  ;;  %v586_v23 = vld [vmem:[%s805_s1 + $0xd0] sm:$0xff]  ;;  %v577_v26 = vld [vmem:[%s805_s1 + $0x88] sm:$0xff]  ;;  %v568_v29 = vld [vmem:[%s805_s1 + $0x40] sm:$0xff] }
  0x14   :  { %328 = vmatpush.bf16.msra.mxu2 %v579_v18  ;;  %v585_v27 = vld [vmem:[%s805_s1 + $0xc8] sm:$0xff]  ;;  %v576_v30 = vld [vmem:[%s805_s1 + $0x80] sm:$0xff]  ;;  %v26_v36 = vld [vmem:[%s804_s0 + $0x10] sm:$0xff] }
  0x15   :  { %342 = vmatpush.bf16.msra.mxu3 %v587_v19  ;;  %v584_v31 = vld [vmem:[%s805_s1 + $0xc0] sm:$0xff]  ;;  %v25_v34 = vld [vmem:[%s804_s0 + $0x8] sm:$0xff]  ;;  %v30_v37 = vld [vmem:[%s804_s0 + $0x30] sm:$0xff] }
  0x16   :  { %301 = vmatpush.bf16.msra.mxu0 %v562_v20  ;;  %v24_v32 = vld [vmem:[%s804_s0] sm:$0xff]  ;;  %v29_v35 = vld [vmem:[%s804_s0 + $0x28] sm:$0xff]  ;;  %v27_v38 = vld [vmem:[%s804_s0 + $0x18] sm:$0xff]  ;;  %v34_v42 = vpack.c.bf16 %v30_v37, %v26_v36 }
  0x17   :  { %315 = vmatpush.bf16.msra.mxu1 %v570_v21  ;;  %v28_v33 = vld [vmem:[%s804_s0 + $0x20] sm:$0xff]  ;;  %v31_v39 = vld [vmem:[%s804_s0 + $0x38] sm:$0xff]  ;;  %v33_v41 = vpack.c.bf16 %v29_v35, %v25_v34  ;;  %v353_v63 = vld [vmem:[%s807_s3 + $0x8] sm:$0xff] }
  0x18   :  { %329 = vmatpush.bf16.msra.mxu2 %v578_v22  ;;  %v32_v40 = vpack.c.bf16 %v28_v33, %v24_v32  ;;  %v35_v43 = vpack.c.bf16 %v31_v39, %v27_v38  ;;  %v595_v44 = vld [vmem:[%s806_s2] ss:$0 sm:$0xff] }
  0x19   :  { %343 = vmatpush.bf16.msra.mxu3 %v586_v23  ;;  %v352_v53 = vld [vmem:[%s807_s3] sm:$0xff] }
  0x1a   :  { %302 = vmatpush.bf16.msra.mxu0 %v561_v24 }
  0x1b   :  { %316 = vmatpush.bf16.msra.mxu1 %v569_v25 }
  0x1c   :  { %330 = vmatpush.bf16.msra.mxu2 %v577_v26  ;;  %v596_v26 = vld [vmem:[%s808_s4] ss:$0 sm:$0xff]  ;;  %s628_s4 = smov [#allocation2]  }
  0x1d   :  { %344 = vmatpush.bf16.msra.mxu3 %v585_v27  ;;  %s418_s11 = sshll.u32 %s628_s4, 4  ;;  %s419_s11 = int_to_ptr.vmem [resolvable:$true] %s418_s11 }
  0x1e   :  { %303 = vmatpush.bf16.msra.mxu0 %v560_v28 }
  0x1f   :  { %317 = vmatpush.bf16.msra.mxu1 %v568_v29 }
  0x20   :  { %331 = vmatpush.bf16.msra.mxu2 %v576_v30  ;;  %v597_v30 = vld [vmem:[%s809_s5] ss:$0 sm:$0xff]  ;;  %s629_s5 = smov 128  }
  0x21   :  { %345 = vmatpush.bf16.msra.mxu3 %v584_v31  ;;  %304 = vmatmul.bf16.vlgmr.msra.gmra.mxu0 %v32_v40 }
  0x22   :  { %318 = vmatmul.bf16.vlgmr.msra.gmra.mxu1 %v33_v41 }
  0x23   :  { %332 = vmatmul.bf16.vlgmr.msra.gmra.mxu2 %v34_v42 }
  0x24   :  { %346 = vmatmul.bf16.vlgmr.msra.gmra.mxu3 %v35_v43 }
  0x9e   :  { %v305_v45 = vpop.f32.mrf.mxu0 }
  0x9f   :  { %v306_v46 = vadd.f32 %v595_v44, %v305_v45  ;;  %v319_v47 = vpop.f32.mrf.mxu1 }
  0xa1   :  { %v320_v48 = vadd.f32 %v319_v47, %v306_v46 }
  0xa6   :  { %v333_v49 = vpop.f32.mrf.mxu2  ;;  %v307_v52 = vpop.f32.mrf.mxu0 }
  0xa7   :  { %v347_v50 = vpop.f32.mrf.mxu3  ;;  %v334_v51 = vadd.f32 %v333_v49, %v320_v48  ;;  %v308_v55 = vadd.f32 %v595_v44, %v307_v52  ;;  %v321_v57 = vpop.f32.mrf.mxu1 }
  0xa9   :  { %v348_v54 = vadd.f32 %v347_v50, %v334_v51  ;;  %v322_v58 = vadd.f32 %v321_v57, %v308_v55 }
  0xab   :  { %v354_v56 = vadd.f32 %v352_v53, %v348_v54 }
  0xad   :  { %356 = vadd.xlane.f32.xlu0 %v354_v56  ;;  %v362_v59 = vmul.f32 %v354_v56, %v354_v56 }
  0xae   :  { %v335_v60 = vpop.f32.mrf.mxu2 }
  0xaf   :  { %v336_v61 = vadd.f32 %v335_v60, %v322_v58  ;;  %364 = vadd.xlane.f32.xlu1 %v362_v59  ;;  %v349_v62 = vpop.f32.mrf.mxu3 }
  0xb1   :  { %v350_v0 = vadd.f32 %v349_v62, %v336_v61 }
  0xb3   :  { %v355_v1 = vadd.f32 %v353_v63, %v350_v0 }
  0xb5   :  { %358 = vadd.xlane.f32.xlu0 %v355_v1  ;;  %v363_v2 = vmul.f32 %v355_v1, %v355_v1 }
  0xb7   :  { %366 = vadd.xlane.f32.xlu1 %v363_v2 }
 0x120   :  { %v357_v3 = vpop.xlane.xlu0 %356 }
 0x121   :  { %v360_v4 = vmul.f32 0.0078125, %v357_v3 }
 0x122   :  { %v365_v5 = vpop.xlane.xlu1 %364 }
 0x123   :  { %v370_v6 = vmul.f32 %v360_v4, %v360_v4  ;;  %v368_v7 = vmul.f32 0.0078125, %v365_v5  ;;  %v374_v25 = vsub.f32 %v354_v56, %v360_v4 }
 0x125   :  { %v372_v8 = vsub.f32 %v368_v7, %v370_v6 }
 0x127   :  { %v376_v9 = vadd.f32 1e-12, %v372_v8 }
 0x128   :  { %v359_v10 = vpop.xlane.xlu0 %358 }
 0x129   :  { %598 = vrsqrt.f32 %v376_v9  ;;  %v361_v11 = vmul.f32 0.0078125, %v359_v10  ;;  %vm384_vm1 = vweird.f32 %v376_v9 }
 0x12a   :  { %v367_v12 = vpop.xlane.xlu1 %366 }
 0x12b   :  { %v371_v13 = vmul.f32 %v361_v11, %v361_v11  ;;  %v369_v14 = vmul.f32 0.0078125, %v367_v12  ;;  %v375_v36 = vsub.f32 %v355_v1, %v361_v11 }
 0x12d   :  { %v373_v15 = vsub.f32 %v369_v14, %v371_v13 }
 0x12f   :  { %v599_v16 = vpop.eup %598  ;;  %v377_v17 = vadd.f32 1e-12, %v373_v15 }
 0x130   :  { %v379_v18 = vmul.f32 %v599_v16, %v376_v9  ;;  %vm385_vm0 = vweird.f32 %v599_v16 }
 0x131   :  { %600 = vrsqrt.f32 %v377_v17  ;;  %vm386_vm2 = vmor %vm384_vm1, %vm385_vm0  ;;  %vm394_vm4 = vweird.f32 %v377_v17 }
 0x132   :  { %v380_v19 = vmul.f32 %v599_v16, %v379_v18 }
 0x134   :  { %v381_v20 = vmul.f32 0.5, %v380_v19 }
 0x136   :  { %v382_v21 = vsub.f32 1.5, %v381_v20 }
 0x137   :  { %v601_v22 = vpop.eup %600 }
 0x138   :  { %v383_v23 = vmul.f32 %v599_v16, %v382_v21  ;;  %v389_v24 = vmul.f32 %v601_v22, %v377_v17  ;;  %vm395_vm3 = vweird.f32 %v601_v22 }
 0x139   :  { %vm396_vm5 = vmor %vm394_vm4, %vm395_vm3 }
 0x13a   :  { %v387_v27 = vsel %vm386_vm2, %v599_v16, %v383_v23  ;;  %v390_v28 = vmul.f32 %v601_v22, %v389_v24 }
 0x13b   :  { %v398_v29 = vmul.f32 %v387_v27, %v374_v25 }
 0x13c   :  { %v391_v31 = vmul.f32 0.5, %v390_v28 }
 0x13d   :  { %v404_v32 = vmul.f32 %v596_v26, %v398_v29 }
 0x13e   :  { %v392_v33 = vsub.f32 1.5, %v391_v31 }
 0x13f   :  { %v410_v34 = vadd.f32 %v597_v30, %v404_v32 }
 0x140   :  { %v393_v35 = vmul.f32 %v601_v22, %v392_v33 }
 0x141   :  { %412 = vst [vmem:[#allocation2] sm:$0xff] %v410_v34 }
 0x142   :  { %v397_v37 = vsel %vm396_vm5, %v601_v22, %v393_v35 }
 0x143   :  { %v399_v38 = vmul.f32 %v397_v37, %v375_v36 }
 0x145   :  { %v405_v39 = vmul.f32 %v596_v26, %v399_v38 }
 0x147   :  { %v411_v40 = vadd.f32 %v597_v30, %v405_v39 }
 0x149   :  { %413 = vst [vmem:[#allocation2 + $0x8] sm:$0xff] %v411_v40 }
 0x14a   :  { %426 = dma.vmem_to_hbm [thread:$0]  %s419_s11, 256, %s421_s14, [#allocation3], %s629_s5, %s629_s5, %s630_s15  }
 0x14b   :  { %626 = dma.done.wait [#allocation3], 256  }
 0x14c   :  { %627 = vsyncadd [#allocation3], 4294967040 }
 0x14d   :  { %431 = vsyncpa [#allocation3], 1 }

</bundles_post_ra>
